<compile_context>
chip_gen: v5e
topology: v5e:2x2
jax: 0.10.0
libtpu: 0.0.40
codegen_flags: <defaults>
</compile_context>

<pallas_src>
import functools
import numpy as np
import jax
import jax.numpy as jnp
from jax.experimental import pallas as pl
from jax.experimental.pallas import tpu as pltpu


BP = 8          # padded graph-batch size (sublane multiple); B must be <= BP
TM_MAX = 512    # max node-tile rows per grid step


def _round_up(x, m):
    return ((x + m - 1) // m) * m


# ----------------------------------------------------------------------------
# Fused forward kernel (grid over node tiles)
# ----------------------------------------------------------------------------
def _fused_forward_kernel(
    # consolidated per-node int32 slab: [text ids | label ids | tlen | llen | gid]
    slab_ref,
    # resident (constant-block) parameters
    wemb_ref, lemb_ref, wt_ref, bt_ref, wl_ref, bl_ref,
    ginv_ref, aw_ref, fw1_ref, fb1_ref, fwo_ref, fbo_ref,
    # output
    out_ref,
    # scratch accumulators (persist across grid steps)
    acc_t_ref, acc_l_ref,
    *, lt, ll,
):
    step = pl.program_id(0)

    @pl.when(step == 0)
    def _():
        acc_t_ref[...] = jnp.zeros_like(acc_t_ref)
        acc_l_ref[...] = jnp.zeros_like(acc_l_ref)

    tm = slab_ref.shape[0]
    vtp, etp = wemb_ref.shape
    vlp, elp = lemb_ref.shape
    bp = acc_t_ref.shape[0]

    # static column layout of the slab
    tid = slab_ref[:, 0:lt]                                  # [tm, Lt]
    lid = slab_ref[:, lt:lt + ll]                            # [tm, Ll]
    tlen = slab_ref[:, lt + ll:lt + ll + 1]                  # [tm, 1] (padded rows: 1)
    llen = slab_ref[:, lt + ll + 1:lt + ll + 2]              # [tm, 1] (padded rows: 0)
    gid = slab_ref[:, lt + ll + 2:lt + ll + 3]               # [tm, 1] (padded rows: BP)

    def bag_counts(ids, lens, vocab_p):
        # Invalid (>= len) positions point at an out-of-range row so they never
        # match the vocab iota.  Integer compares are accumulated and cast once.
        m, L = ids.shape
        pos = jax.lax.broadcasted_iota(jnp.int32, (m, L), 1)
        ids_m = jnp.where(pos < lens, ids, vocab_p)          # [m, L]
        v_iota = jax.lax.broadcasted_iota(jnp.int32, (m, vocab_p), 1)
        counts = jnp.zeros((m, vocab_p), jnp.int32)
        # TODO(synk): for long sequences switch to lax.fori_loop(..., unroll=True).
        for l in range(L):                                   # small static trip count
            counts = counts + (v_iota == ids_m[:, l:l + 1]).astype(jnp.int32)
        return counts.astype(jnp.float32)                    # [m, Vp]

    # ---- text branch: gather+pool as counts @ table on the MXU, mean over len ----
    cnt_t = bag_counts(tid, tlen, vtp)
    tinv = pl.reciprocal(tlen.astype(jnp.float32), approx=True)   # [tm, 1]
    if vtp <= etp:
        # fold the sequence mean into the (smaller) counts before the cast
        cnt_t = cnt_t * tinv
        pooled_t = jnp.dot(cnt_t.astype(jnp.bfloat16), wemb_ref[...],
                           preferred_element_type=jnp.float32)    # [tm, EtP]
    else:
        pooled_t = jnp.dot(cnt_t.astype(jnp.bfloat16), wemb_ref[...],
                           preferred_element_type=jnp.float32) * tinv
    h_t = jnp.dot(pooled_t.astype(jnp.bfloat16), wt_ref[...],
                  preferred_element_type=jnp.float32) + bt_ref[...]
    h_t = jnp.maximum(h_t, 0.0)                                   # [tm, HP]

    # ---- label branch: masked sum (no mean), matching the reference module ----
    cnt_l = bag_counts(lid, llen, vlp)
    pooled_l = jnp.dot(cnt_l.astype(jnp.bfloat16), lemb_ref[...],
                       preferred_element_type=jnp.float32)        # [tm, ElP]
    h_l = jnp.dot(pooled_l.astype(jnp.bfloat16), wl_ref[...],
                  preferred_element_type=jnp.float32) + bl_ref[...]
    h_l = jnp.maximum(h_l, 0.0)                                   # [tm, HP]

    # ---- per-graph segment-sum readout (bf16 MXU operands, f32 accumulation) ----
    # seg[n, b] = 1 iff node n belongs to graph b; padded nodes (gid==BP) match none.
    seg = (gid == jax.lax.broadcasted_iota(jnp.int32, (tm, bp), 1)).astype(jnp.bfloat16)
    acc_t_ref[...] += jnp.einsum('nb,nh->bh', seg, h_t.astype(jnp.bfloat16),
                                 preferred_element_type=jnp.float32)
    acc_l_ref[...] += jnp.einsum('nb,nh->bh', seg, h_l.astype(jnp.bfloat16),
                                 preferred_element_type=jnp.float32)

    # ---- epilogue (last tile): mean, adap Linear(2,1), MLLinear fusion head ----
    @pl.when(step == pl.num_programs(0) - 1)
    def _():
        ginv = ginv_ref[...]                                      # [BP, 1]
        read_t = acc_t_ref[...] * ginv
        read_l = acc_l_ref[...] * ginv
        aw0 = aw_ref[0, 0]                                        # scalars from SMEM
        aw1 = aw_ref[0, 1]
        comb = read_t * aw0 + read_l * aw1                        # adap (no bias)
        h = jnp.dot(comb.astype(jnp.bfloat16), fw1_ref[...],
                    preferred_element_type=jnp.float32) + fb1_ref[...]
        h = jnp.maximum(h, 0.0)                                   # MLLinear hidden
        out_ref[...] = jnp.dot(h.astype(jnp.bfloat16), fwo_ref[...],
                               preferred_element_type=jnp.float32) + fbo_ref[...]


def _vmem_limit_bytes(tm, cip, vtp, etp, vlp, elp, hp, op, lt, ll, buffered_consts):
    i32 = f32 = 4
    bf16 = 2
    cbuf = 1 if buffered_consts else 2
    node_slab = 2 * tm * cip * i32                                # double-buffered slab
    const_blocks = cbuf * ((vtp * etp + vlp * elp
                            + etp * hp + elp * hp + hp * hp + hp * op) * bf16
                           + (4 * hp + op + BP) * f32)
    out_block = BP * op * f32
    scratch = 2 * BP * hp * f32
    transient = tm * ((lt + 1) * vtp + (ll + 1) * vlp + etp + elp + 2 * hp) * f32
    est = node_slab + const_blocks + out_block + scratch + transient
    return int(min(max(2 * est, 32 * 1024 * 1024), 64 * 1024 * 1024))


def fused_forward(params, slab, ginv, *, lt, ll, tm):
    NP, CiP = slab.shape
    VtP, EtP = params["word_emb"].shape
    VlP, ElP = params["label_emb"].shape
    HP = params["w_text"].shape[1]
    OP = params["fusion_wo"].shape[1]
    grid = (NP // tm,)

    node_map = lambda i: (i, 0)
    const_map = lambda i: (0, 0)
    kernel = functools.partial(_fused_forward_kernel, lt=lt, ll=ll)

    def build(buffered_consts):
        ck = dict(pipeline_mode=pl.Buffered(1)) if buffered_consts else {}
        cspec = lambda shape: pl.BlockSpec(shape, const_map, **ck)
        in_specs = [
            pl.BlockSpec((tm, CiP), node_map),                    # fused per-node int slab
            cspec((VtP, EtP)),                                    # word embedding (bf16)
            cspec((VlP, ElP)),                                    # label embedding (bf16)
            cspec((EtP, HP)), cspec((1, HP)),                     # text projection W, b
            cspec((ElP, HP)), cspec((1, HP)),                     # label projection W, b
            cspec((BP, 1)),                                       # 1/graph_len
            pl.BlockSpec(memory_space=pltpu.MemorySpace.SMEM),    # adap weights -> scalars
            cspec((HP, HP)), cspec((1, HP)),                      # fusion hidden W, b
            cspec((HP, OP)), cspec((1, OP)),                      # fusion output W, b
        ]
        out_spec = pl.BlockSpec((BP, OP), const_map)
        return pl.pallas_call(
            kernel,
            out_shape=jax.ShapeDtypeStruct((BP, OP), jnp.float32),
            grid=grid,
            in_specs=in_specs,
            out_specs=out_spec,
            scratch_shapes=[pltpu.VMEM((BP, HP), jnp.float32),
                            pltpu.VMEM((BP, HP), jnp.float32)],
            compiler_params=pltpu.CompilerParams(
                # node axis is a reduction (segment accumulator) -> sequential
                dimension_semantics=("arbitrary",),
                vmem_limit_bytes=_vmem_limit_bytes(
                    tm, CiP, VtP, EtP, VlP, ElP, HP, OP, lt, ll, buffered_consts)),
        )

    args = (slab,
            params["word_emb"], params["label_emb"],
            params["w_text"], params["b_text"],
            params["w_label"], params["b_label"],
            ginv, params["adap_w"],
            params["fusion_w1"], params["fusion_b1"],
            params["fusion_wo"], params["fusion_bo"])

    try:
        return build(True)(*args)
    except Exception:
        # Fallback for JAX builds where pipeline_mode=pl.Buffered(1) is not
        # honored by pallas_call; identical semantics, default buffering.
        return build(False)(*args)


# ----------------------------------------------------------------------------
# Parameters (stored in the 128-lane padded / bf16-operand layout)
# ----------------------------------------------------------------------------
def _pad2(a, rows, cols):
    out = jnp.zeros((rows, cols), a.dtype)
    return out.at[:a.shape[0], :a.shape[1]].set(a)


def make_params(key, *, text_vocab, total_num, embedding_text, embedding_label,
                hidden_dimension, output_dim):
    VtP = _round_up(text_vocab, 128)
    VlP = _round_up(total_num, 128)
    EtP = _round_up(embedding_text, 128)
    ElP = _round_up(embedding_label, 128)
    HP = _round_up(hidden_dimension, 128)
    OP = _round_up(output_dim, 128)

    ks = jax.random.split(key, 7)
    u = lambda k, shape, s=0.1: jax.random.uniform(k, shape, jnp.float32, -s, s)
    bf16 = lambda a: a.astype(jnp.bfloat16)
    return {
        # embedding_Word.weight / self.Embeddings.weight (xavier-like uniform)
        "word_emb": bf16(_pad2(u(ks[0], (text_vocab, embedding_text)), VtP, EtP)),
        "label_emb": bf16(_pad2(u(ks[1], (total_num, embedding_label)), VlP, ElP)),
        # stand-in for weighted_GCN per-type projection (in_feat -> hidden)
        "w_text": bf16(_pad2(u(ks[2], (embedding_text, hidden_dimension)), EtP, HP)),
        "b_text": jnp.zeros((1, HP), jnp.float32),
        "w_label": bf16(_pad2(u(ks[3], (embedding_label, hidden_dimension)), ElP, HP)),
        "b_label": jnp.zeros((1, HP), jnp.float32),
        # self.adap = nn.Linear(2, 1, bias=False)  (lives in SMEM inside the kernel)
        "adap_w": u(ks[4], (1, 2), 0.5),
        # self.fusion = MLLinear([hidden, hidden], output_dim)
        "fusion_w1": bf16(_pad2(u(ks[5], (hidden_dimension, hidden_dimension)), HP, HP)),
        "fusion_b1": jnp.zeros((1, HP), jnp.float32),
        "fusion_wo": bf16(_pad2(u(ks[6], (hidden_dimension, output_dim)), HP, OP)),
        "fusion_bo": jnp.zeros((1, OP), jnp.float32),
    }


# ----------------------------------------------------------------------------
# Forward orchestration (host-side padding / metadata only; one pallas_call)
# ----------------------------------------------------------------------------
def dynamic_graph_forward(params, text_ids, text_lens, label_ids, label_lens,
                          lengths, *, output_dim):
    """Mirrors DynamicGraph.forward (dropout=0 -> identity, sameMatirx=None)."""
    lengths = [int(l) for l in lengths]
    B = len(lengths)
    N = int(sum(lengths))
    assert B <= BP, f"batch {B} > padded batch {BP}"

    tm = TM_MAX if N >= TM_MAX else _round_up(N, 8)
    NP = _round_up(N, tm)

    tids = np.asarray(text_ids, dtype=np.int32)
    lids = np.asarray(label_ids, dtype=np.int32)
    tl = np.asarray(text_lens, dtype=np.int32)
    lls = np.asarray(label_lens, dtype=np.int32)
    Lt = tids.shape[1]
    Ll = lids.shape[1]

    # One lane-dense int32 slab per node: [text ids | label ids | tlen | llen | gid]
    CiP = _round_up(Lt + Ll + 3, 128)
    slab = np.zeros((NP, CiP), np.int32)
    slab[:N, 0:Lt] = tids
    slab[:N, Lt:Lt + Ll] = lids
    slab[:, Lt + Ll] = 1                      # padded rows keep text_len=1 (finite recip)
    slab[:N, Lt + Ll] = tl
    slab[:N, Lt + Ll + 1] = lls               # padded rows keep label_len=0 (empty bag)
    gid = np.full((NP,), BP, dtype=np.int32)  # sentinel: padded nodes match no graph
    start = 0
    for b, L in enumerate(lengths):
        gid[start:start + L] = b
        start += L
    slab[:, Lt + Ll + 2] = gid

    ginv = np.zeros((BP, 1), np.float32)
    for b, L in enumerate(lengths):
        ginv[b, 0] = 1.0 / float(L) if L > 0 else 0.0

    out_padded = fused_forward(params, jnp.asarray(slab), jnp.asarray(ginv),
                               lt=Lt, ll=Ll, tm=tm)
    return out_padded[:B, :output_dim]


# ----------------------------------------------------------------------------
# Pure-JAX reference (same stand-in semantics, f32 math on the bf16 params)
# ----------------------------------------------------------------------------
def reference_forward(params, text_ids, text_lens, label_ids, label_lens, lengths):
    f32 = lambda a: jnp.asarray(a, jnp.float32)
    we, le = f32(params["word_emb"]), f32(params["label_emb"])
    N, Lt = text_ids.shape
    _, Ll = label_ids.shape
    tmask = (jnp.arange(Lt)[None, :] < text_lens[:, None]).astype(jnp.float32)
    lmask = (jnp.arange(Ll)[None, :] < label_lens[:, None]).astype(jnp.float32)
    text_feat = jnp.einsum('nle,nl->ne', we[text_ids], tmask) / text_lens[:, None]
    label_feat = jnp.einsum('nle,nl->ne', le[label_ids], lmask)
    h_t = jax.nn.relu(text_feat @ f32(params["w_text"]) + params["b_text"])
    h_l = jax.nn.relu(label_feat @ f32(params["w_label"]) + params["b_label"])
    reads_t, reads_l, start = [], [], 0
    for L in lengths:
        reads_t.append(h_t[start:start + L].mean(0))
        reads_l.append(h_l[start:start + L].mean(0))
        start += L
    rt, rl = jnp.stack(reads_t), jnp.stack(reads_l)
    aw = params["adap_w"]
    comb = aw[0, 0] * rt + aw[0, 1] * rl
    h = jax.nn.relu(comb @ f32(params["fusion_w1"]) + params["fusion_b1"])
    return h @ f32(params["fusion_wo"]) + params["fusion_bo"]


if __name__ == "__main__":
    TEXT_VOCAB = 50
    TOTAL_NUM = 20
    EMB_TEXT = 32
    EMB_LABEL = 16
    HIDDEN = 32
    OUTPUT_DIM = 4
    lengths = [3, 5]          # nodes per graph -> B = 2, sum = 8 nodes
    N = sum(lengths)
    LT, LL = 6, 4             # max text / label sequence length per node

    key = jax.random.PRNGKey(0)
    kp, k1, k2, k3, k4 = jax.random.split(key, 5)

    params = make_params(kp, text_vocab=TEXT_VOCAB, total_num=TOTAL_NUM,
                         embedding_text=EMB_TEXT, embedding_label=EMB_LABEL,
                         hidden_dimension=HIDDEN, output_dim=OUTPUT_DIM)

    text_ids = jax.random.randint(k1, (N, LT), 0, TEXT_VOCAB, dtype=jnp.int32)
    label_ids = jax.random.randint(k2, (N, LL), 0, TOTAL_NUM, dtype=jnp.int32)
    text_lens = jax.random.randint(k3, (N,), 1, LT + 1, dtype=jnp.int32)
    label_lens = jax.random.randint(k4, (N,), 1, LL + 1, dtype=jnp.int32)

    out = dynamic_graph_forward(params, text_ids, text_lens, label_ids,
                                label_lens, lengths, output_dim=OUTPUT_DIM)
    out = jax.block_until_ready(out)
    assert out.shape == (len(lengths), OUTPUT_DIM), out.shape

    ref = reference_forward(params, text_ids, text_lens, label_ids, label_lens,
                            lengths)[:, :OUTPUT_DIM]
    assert jnp.allclose(out, ref, rtol=5e-2, atol=1e-3), (out, ref)
    print("KERNEL_OK")
</pallas_src>

<mosaic_0001>
module attributes {stable_mosaic.version = 11 : i64} {
  func.func @_fused_forward_kernel(%arg0: i32, %arg1: memref<8x128xi32, #tpu.memory_space<vmem>>, %arg2: memref<128x128xbf16, #tpu.memory_space<vmem>>, %arg3: memref<128x128xbf16, #tpu.memory_space<vmem>>, %arg4: memref<128x128xbf16, #tpu.memory_space<vmem>>, %arg5: memref<1x128xf32, #tpu.memory_space<vmem>>, %arg6: memref<128x128xbf16, #tpu.memory_space<vmem>>, %arg7: memref<1x128xf32, #tpu.memory_space<vmem>>, %arg8: memref<8x1xf32, #tpu.memory_space<vmem>>, %arg9: memref<1x2xf32, #tpu.memory_space<smem>>, %arg10: memref<128x128xbf16, #tpu.memory_space<vmem>>, %arg11: memref<1x128xf32, #tpu.memory_space<vmem>>, %arg12: memref<128x128xbf16, #tpu.memory_space<vmem>>, %arg13: memref<1x128xf32, #tpu.memory_space<vmem>>, %arg14: memref<8x128xf32, #tpu.memory_space<vmem>>, %arg15: memref<8x128xf32, #tpu.memory_space<vmem>>, %arg16: memref<8x128xf32, #tpu.memory_space<vmem>>) attributes {dimension_semantics = [#tpu.dimension_semantics<arbitrary>], iteration_bounds = array<i64: 1>, scalar_prefetch = 0 : i64, scratch_operands = 2 : i64, tpu.core_type = #tpu.core_type<tc>, window_params = [{transform_indices = @transform_0, window_bounds = array<i64: 8, 128>}, {pipeline_mode = #tpu.pipeline_mode<synchronous>, transform_indices = @transform_1, window_bounds = array<i64: 128, 128>}, {pipeline_mode = #tpu.pipeline_mode<synchronous>, transform_indices = @transform_2, window_bounds = array<i64: 128, 128>}, {pipeline_mode = #tpu.pipeline_mode<synchronous>, transform_indices = @transform_3, window_bounds = array<i64: 128, 128>}, {pipeline_mode = #tpu.pipeline_mode<synchronous>, transform_indices = @transform_4, window_bounds = array<i64: 1, 128>}, {pipeline_mode = #tpu.pipeline_mode<synchronous>, transform_indices = @transform_5, window_bounds = array<i64: 128, 128>}, {pipeline_mode = #tpu.pipeline_mode<synchronous>, transform_indices = @transform_6, window_bounds = array<i64: 1, 128>}, {pipeline_mode = #tpu.pipeline_mode<synchronous>, transform_indices = @transform_7, window_bounds = array<i64: 8, 1>}, {transform_indices = @transform_8, window_bounds = array<i64: 1, 2>}, {pipeline_mode = #tpu.pipeline_mode<synchronous>, transform_indices = @transform_9, window_bounds = array<i64: 128, 128>}, {pipeline_mode = #tpu.pipeline_mode<synchronous>, transform_indices = @transform_10, window_bounds = array<i64: 1, 128>}, {pipeline_mode = #tpu.pipeline_mode<synchronous>, transform_indices = @transform_11, window_bounds = array<i64: 128, 128>}, {pipeline_mode = #tpu.pipeline_mode<synchronous>, transform_indices = @transform_12, window_bounds = array<i64: 1, 128>}, {pipeline_mode = #tpu.pipeline_mode<synchronous>, transform_indices = @transform_13, window_bounds = array<i64: 8, 128>}]} {
    %c0_i32 = arith.constant 0 : i32
    %0 = arith.cmpi eq, %arg0, %c0_i32 : i32
    %1 = arith.extui %0 : i1 to i32
    %c0_i32_0 = arith.constant 0 : i32
    %2 = arith.cmpi ne, %1, %c0_i32_0 : i32
    scf.if %2 {
      %cst_38 = arith.constant 0.000000e+00 : f32
      %119 = vector.broadcast %cst_38 : f32 to vector<8x128xf32>
      %c0_39 = arith.constant 0 : index
      %c0_40 = arith.constant 0 : index
      %120 = vector.load %arg15[%c0_39, %c0_40] : memref<8x128xf32, #tpu.memory_space<vmem>>, vector<8x128xf32>
      tpu.vector_store %arg15[%c0_39, %c0_40], %119 {strides = array<i32>} : memref<8x128xf32, #tpu.memory_space<vmem>>, vector<8x128xf32>,
      %cst_41 = arith.constant 0.000000e+00 : f32
      %121 = vector.broadcast %cst_41 : f32 to vector<8x128xf32>
      %c0_42 = arith.constant 0 : index
      %c0_43 = arith.constant 0 : index
      %122 = vector.load %arg16[%c0_42, %c0_43] : memref<8x128xf32, #tpu.memory_space<vmem>>, vector<8x128xf32>
      tpu.vector_store %arg16[%c0_42, %c0_43], %121 {strides = array<i32>} : memref<8x128xf32, #tpu.memory_space<vmem>>, vector<8x128xf32>,
    } else {
    }
    %c0 = arith.constant 0 : index
    %c0_1 = arith.constant 0 : index
    %3 = vector.load %arg1[%c0, %c0_1] : memref<8x128xi32, #tpu.memory_space<vmem>>, vector<8x6xi32>
    %c0_2 = arith.constant 0 : index
    %c6 = arith.constant 6 : index
    %4 = vector.load %arg1[%c0_2, %c6] : memref<8x128xi32, #tpu.memory_space<vmem>>, vector<8x4xi32>
    %c0_3 = arith.constant 0 : index
    %c10 = arith.constant 10 : index
    %5 = vector.load %arg1[%c0_3, %c10] : memref<8x128xi32, #tpu.memory_space<vmem>>, vector<8x1xi32>
    %c0_4 = arith.constant 0 : index
    %c11 = arith.constant 11 : index
    %6 = vector.load %arg1[%c0_4, %c11] : memref<8x128xi32, #tpu.memory_space<vmem>>, vector<8x1xi32>
    %c0_5 = arith.constant 0 : index
    %c12 = arith.constant 12 : index
    %7 = vector.load %arg1[%c0_5, %c12] : memref<8x128xi32, #tpu.memory_space<vmem>>, vector<8x1xi32>
    %8 = tpu.iota {dimensions = array<i32: 1>} : vector<8x6xi32>
    %9 = vector.broadcast %5 : vector<8x1xi32> to vector<8x6xi32>
    %10 = arith.cmpi slt, %8, %9 : vector<8x6xi32>
    %c128_i32 = arith.constant 128 : i32
    %11 = vector.broadcast %c128_i32 : i32 to vector<8x6xi32>
    %12 = arith.select %10, %3, %11 : vector<8x6xi1>, vector<8x6xi32>
    %13 = tpu.iota {dimensions = array<i32: 1>} : vector<8x128xi32>
    %c0_i32_6 = arith.constant 0 : i32
    %14 = vector.broadcast %c0_i32_6 : i32 to vector<8x128xi32>
    %15 = vector.extract_strided_slice %12 {offsets = [0, 0], sizes = [8, 1], strides = [1, 1]} : vector<8x6xi32> to vector<8x1xi32>
    %16 = vector.broadcast %15 : vector<8x1xi32> to vector<8x128xi32>
    %17 = arith.cmpi eq, %13, %16 : vector<8x128xi32>
    %18 = arith.extui %17 : vector<8x128xi1> to vector<8x128xi32>
    %19 = arith.addi %14, %18 : vector<8x128xi32>
    %20 = vector.extract_strided_slice %12 {offsets = [0, 1], sizes = [8, 1], strides = [1, 1]} : vector<8x6xi32> to vector<8x1xi32>
    %21 = vector.broadcast %20 : vector<8x1xi32> to vector<8x128xi32>
    %22 = arith.cmpi eq, %13, %21 : vector<8x128xi32>
    %23 = arith.extui %22 : vector<8x128xi1> to vector<8x128xi32>
    %24 = arith.addi %19, %23 : vector<8x128xi32>
    %25 = vector.extract_strided_slice %12 {offsets = [0, 2], sizes = [8, 1], strides = [1, 1]} : vector<8x6xi32> to vector<8x1xi32>
    %26 = vector.broadcast %25 : vector<8x1xi32> to vector<8x128xi32>
    %27 = arith.cmpi eq, %13, %26 : vector<8x128xi32>
    %28 = arith.extui %27 : vector<8x128xi1> to vector<8x128xi32>
    %29 = arith.addi %24, %28 : vector<8x128xi32>
    %30 = vector.extract_strided_slice %12 {offsets = [0, 3], sizes = [8, 1], strides = [1, 1]} : vector<8x6xi32> to vector<8x1xi32>
    %31 = vector.broadcast %30 : vector<8x1xi32> to vector<8x128xi32>
    %32 = arith.cmpi eq, %13, %31 : vector<8x128xi32>
    %33 = arith.extui %32 : vector<8x128xi1> to vector<8x128xi32>
    %34 = arith.addi %29, %33 : vector<8x128xi32>
    %35 = vector.extract_strided_slice %12 {offsets = [0, 4], sizes = [8, 1], strides = [1, 1]} : vector<8x6xi32> to vector<8x1xi32>
    %36 = vector.broadcast %35 : vector<8x1xi32> to vector<8x128xi32>
    %37 = arith.cmpi eq, %13, %36 : vector<8x128xi32>
    %38 = arith.extui %37 : vector<8x128xi1> to vector<8x128xi32>
    %39 = arith.addi %34, %38 : vector<8x128xi32>
    %40 = vector.extract_strided_slice %12 {offsets = [0, 5], sizes = [8, 1], strides = [1, 1]} : vector<8x6xi32> to vector<8x1xi32>
    %41 = vector.broadcast %40 : vector<8x1xi32> to vector<8x128xi32>
    %42 = arith.cmpi eq, %13, %41 : vector<8x128xi32>
    %43 = arith.extui %42 : vector<8x128xi1> to vector<8x128xi32>
    %44 = arith.addi %39, %43 : vector<8x128xi32>
    %45 = arith.sitofp %44 : vector<8x128xi32> to vector<8x128xf32>
    %46 = arith.sitofp %5 : vector<8x1xi32> to vector<8x1xf32>
    %47 = tpu.reciprocal %46 {approx = true} : vector<8x1xf32> -> vector<8x1xf32>
    %48 = vector.broadcast %47 : vector<8x1xf32> to vector<8x128xf32>
    %49 = arith.mulf %45, %48 : vector<8x128xf32>
    %50 = arith.truncf %49 : vector<8x128xf32> to vector<8x128xbf16>
    %c0_7 = arith.constant 0 : index
    %c0_8 = arith.constant 0 : index
    %51 = vector.load %arg2[%c0_7, %c0_8] : memref<128x128xbf16, #tpu.memory_space<vmem>>, vector<128x128xbf16>
    %cst = arith.constant dense<0.000000e+00> : vector<8x128xf32>
    %52 = tpu.matmul %50, %51, %cst {dimension_numbers = #tpu.dot_dimension_numbers<[1], [0], [0], [1], [0, 0, 1, 1], [], []>} : vector<8x128xbf16>, vector<128x128xbf16>, vector<8x128xf32> -> vector<8x128xf32>
    %53 = arith.truncf %52 : vector<8x128xf32> to vector<8x128xbf16>
    %c0_9 = arith.constant 0 : index
    %c0_10 = arith.constant 0 : index
    %54 = vector.load %arg4[%c0_9, %c0_10] : memref<128x128xbf16, #tpu.memory_space<vmem>>, vector<128x128xbf16>
    %cst_11 = arith.constant dense<0.000000e+00> : vector<8x128xf32>
    %55 = tpu.matmul %53, %54, %cst_11 {dimension_numbers = #tpu.dot_dimension_numbers<[1], [0], [0], [1], [0, 0, 1, 1], [], []>} : vector<8x128xbf16>, vector<128x128xbf16>, vector<8x128xf32> -> vector<8x128xf32>
    %c0_12 = arith.constant 0 : index
    %c0_13 = arith.constant 0 : index
    %56 = vector.load %arg5[%c0_12, %c0_13] : memref<1x128xf32, #tpu.memory_space<vmem>>, vector<1x128xf32>
    %57 = vector.broadcast %56 : vector<1x128xf32> to vector<8x128xf32>
    %58 = arith.addf %55, %57 : vector<8x128xf32>
    %cst_14 = arith.constant 0.000000e+00 : f32
    %59 = vector.broadcast %cst_14 : f32 to vector<8x128xf32>
    %60 = arith.maximumf %58, %59 : vector<8x128xf32>
    %61 = tpu.iota {dimensions = array<i32: 1>} : vector<8x4xi32>
    %62 = vector.broadcast %6 : vector<8x1xi32> to vector<8x4xi32>
    %63 = arith.cmpi slt, %61, %62 : vector<8x4xi32>
    %c128_i32_15 = arith.constant 128 : i32
    %64 = vector.broadcast %c128_i32_15 : i32 to vector<8x4xi32>
    %65 = arith.select %63, %4, %64 : vector<8x4xi1>, vector<8x4xi32>
    %66 = tpu.iota {dimensions = array<i32: 1>} : vector<8x128xi32>
    %c0_i32_16 = arith.constant 0 : i32
    %67 = vector.broadcast %c0_i32_16 : i32 to vector<8x128xi32>
    %68 = vector.extract_strided_slice %65 {offsets = [0, 0], sizes = [8, 1], strides = [1, 1]} : vector<8x4xi32> to vector<8x1xi32>
    %69 = vector.broadcast %68 : vector<8x1xi32> to vector<8x128xi32>
    %70 = arith.cmpi eq, %66, %69 : vector<8x128xi32>
    %71 = arith.extui %70 : vector<8x128xi1> to vector<8x128xi32>
    %72 = arith.addi %67, %71 : vector<8x128xi32>
    %73 = vector.extract_strided_slice %65 {offsets = [0, 1], sizes = [8, 1], strides = [1, 1]} : vector<8x4xi32> to vector<8x1xi32>
    %74 = vector.broadcast %73 : vector<8x1xi32> to vector<8x128xi32>
    %75 = arith.cmpi eq, %66, %74 : vector<8x128xi32>
    %76 = arith.extui %75 : vector<8x128xi1> to vector<8x128xi32>
    %77 = arith.addi %72, %76 : vector<8x128xi32>
    %78 = vector.extract_strided_slice %65 {offsets = [0, 2], sizes = [8, 1], strides = [1, 1]} : vector<8x4xi32> to vector<8x1xi32>
    %79 = vector.broadcast %78 : vector<8x1xi32> to vector<8x128xi32>
    %80 = arith.cmpi eq, %66, %79 : vector<8x128xi32>
    %81 = arith.extui %80 : vector<8x128xi1> to vector<8x128xi32>
    %82 = arith.addi %77, %81 : vector<8x128xi32>
    %83 = vector.extract_strided_slice %65 {offsets = [0, 3], sizes = [8, 1], strides = [1, 1]} : vector<8x4xi32> to vector<8x1xi32>
    %84 = vector.broadcast %83 : vector<8x1xi32> to vector<8x128xi32>
    %85 = arith.cmpi eq, %66, %84 : vector<8x128xi32>
    %86 = arith.extui %85 : vector<8x128xi1> to vector<8x128xi32>
    %87 = arith.addi %82, %86 : vector<8x128xi32>
    %88 = arith.sitofp %87 : vector<8x128xi32> to vector<8x128xf32>
    %89 = arith.truncf %88 : vector<8x128xf32> to vector<8x128xbf16>
    %c0_17 = arith.constant 0 : index
    %c0_18 = arith.constant 0 : index
    %90 = vector.load %arg3[%c0_17, %c0_18] : memref<128x128xbf16, #tpu.memory_space<vmem>>, vector<128x128xbf16>
    %cst_19 = arith.constant dense<0.000000e+00> : vector<8x128xf32>
    %91 = tpu.matmul %89, %90, %cst_19 {dimension_numbers = #tpu.dot_dimension_numbers<[1], [0], [0], [1], [0, 0, 1, 1], [], []>} : vector<8x128xbf16>, vector<128x128xbf16>, vector<8x128xf32> -> vector<8x128xf32>
    %92 = arith.truncf %91 : vector<8x128xf32> to vector<8x128xbf16>
    %c0_20 = arith.constant 0 : index
    %c0_21 = arith.constant 0 : index
    %93 = vector.load %arg6[%c0_20, %c0_21] : memref<128x128xbf16, #tpu.memory_space<vmem>>, vector<128x128xbf16>
    %cst_22 = arith.constant dense<0.000000e+00> : vector<8x128xf32>
    %94 = tpu.matmul %92, %93, %cst_22 {dimension_numbers = #tpu.dot_dimension_numbers<[1], [0], [0], [1], [0, 0, 1, 1], [], []>} : vector<8x128xbf16>, vector<128x128xbf16>, vector<8x128xf32> -> vector<8x128xf32>
    %c0_23 = arith.constant 0 : index
    %c0_24 = arith.constant 0 : index
    %95 = vector.load %arg7[%c0_23, %c0_24] : memref<1x128xf32, #tpu.memory_space<vmem>>, vector<1x128xf32>
    %96 = vector.broadcast %95 : vector<1x128xf32> to vector<8x128xf32>
    %97 = arith.addf %94, %96 : vector<8x128xf32>
    %cst_25 = arith.constant 0.000000e+00 : f32
    %98 = vector.broadcast %cst_25 : f32 to vector<8x128xf32>
    %99 = arith.maximumf %97, %98 : vector<8x128xf32>
    %100 = tpu.iota {dimensions = array<i32: 1>} : vector<8x8xi32>
    %101 = vector.broadcast %7 : vector<8x1xi32> to vector<8x8xi32>
    %102 = arith.cmpi eq, %101, %100 : vector<8x8xi32>
    %103 = arith.extui %102 : vector<8x8xi1> to vector<8x8xi32>
    %104 = arith.sitofp %103 : vector<8x8xi32> to vector<8x8xf32>
    %105 = arith.truncf %104 : vector<8x8xf32> to vector<8x8xbf16>
    %c0_26 = arith.constant 0 : index
    %c0_27 = arith.constant 0 : index
    %106 = vector.load %arg15[%c0_26, %c0_27] : memref<8x128xf32, #tpu.memory_space<vmem>>, vector<8x128xf32>
    %107 = arith.truncf %60 : vector<8x128xf32> to vector<8x128xbf16>
    "tpu.trace_start"() <{level = 10 : i32, message = "nb,nh->bh"}> : () -> ()
    %cst_28 = arith.constant dense<0.000000e+00> : vector<8x128xf32>
    %108 = tpu.matmul %105, %107, %cst_28 {dimension_numbers = #tpu.dot_dimension_numbers<[0], [0], [1], [1], [0, 1, 1, 1], [], []>} : vector<8x8xbf16>, vector<8x128xbf16>, vector<8x128xf32> -> vector<8x128xf32>
    "tpu.trace_stop"() : () -> ()
    %109 = arith.addf %106, %108 : vector<8x128xf32>
    %c0_29 = arith.constant 0 : index
    %c0_30 = arith.constant 0 : index
    %110 = vector.load %arg15[%c0_29, %c0_30] : memref<8x128xf32, #tpu.memory_space<vmem>>, vector<8x128xf32>
    tpu.vector_store %arg15[%c0_29, %c0_30], %109 {strides = array<i32>} : memref<8x128xf32, #tpu.memory_space<vmem>>, vector<8x128xf32>,
    %c0_31 = arith.constant 0 : index
    %c0_32 = arith.constant 0 : index
    %111 = vector.load %arg16[%c0_31, %c0_32] : memref<8x128xf32, #tpu.memory_space<vmem>>, vector<8x128xf32>
    %112 = arith.truncf %99 : vector<8x128xf32> to vector<8x128xbf16>
    "tpu.trace_start"() <{level = 10 : i32, message = "nb,nh->bh"}> : () -> ()
    %cst_33 = arith.constant dense<0.000000e+00> : vector<8x128xf32>
    %113 = tpu.matmul %105, %112, %cst_33 {dimension_numbers = #tpu.dot_dimension_numbers<[0], [0], [1], [1], [0, 1, 1, 1], [], []>} : vector<8x8xbf16>, vector<8x128xbf16>, vector<8x128xf32> -> vector<8x128xf32>
    "tpu.trace_stop"() : () -> ()
    %114 = arith.addf %111, %113 : vector<8x128xf32>
    %c0_34 = arith.constant 0 : index
    %c0_35 = arith.constant 0 : index
    %115 = vector.load %arg16[%c0_34, %c0_35] : memref<8x128xf32, #tpu.memory_space<vmem>>, vector<8x128xf32>
    tpu.vector_store %arg16[%c0_34, %c0_35], %114 {strides = array<i32>} : memref<8x128xf32, #tpu.memory_space<vmem>>, vector<8x128xf32>,
    %c0_i32_36 = arith.constant 0 : i32
    %116 = arith.cmpi eq, %arg0, %c0_i32_36 : i32
    %117 = arith.extui %116 : i1 to i32
    %c0_i32_37 = arith.constant 0 : i32
    %118 = arith.cmpi ne, %117, %c0_i32_37 : i32
    scf.if %118 {
      %c0_38 = arith.constant 0 : index
      %c0_39 = arith.constant 0 : index
      %119 = vector.load %arg8[%c0_38, %c0_39] : memref<8x1xf32, #tpu.memory_space<vmem>>, vector<8x1xf32>
      %c0_40 = arith.constant 0 : index
      %c0_41 = arith.constant 0 : index
      %120 = vector.load %arg15[%c0_40, %c0_41] : memref<8x128xf32, #tpu.memory_space<vmem>>, vector<8x128xf32>
      %121 = vector.broadcast %119 : vector<8x1xf32> to vector<8x128xf32>
      %122 = arith.mulf %120, %121 : vector<8x128xf32>
      %c0_42 = arith.constant 0 : index
      %c0_43 = arith.constant 0 : index
      %123 = vector.load %arg16[%c0_42, %c0_43] : memref<8x128xf32, #tpu.memory_space<vmem>>, vector<8x128xf32>
      %124 = vector.broadcast %119 : vector<8x1xf32> to vector<8x128xf32>
      %125 = arith.mulf %123, %124 : vector<8x128xf32>
      %c0_44 = arith.constant 0 : index
      %c0_45 = arith.constant 0 : index
      %126 = memref.load %arg9[%c0_44, %c0_45] : memref<1x2xf32, #tpu.memory_space<smem>>
      %c0_46 = arith.constant 0 : index
      %c1 = arith.constant 1 : index
      %127 = memref.load %arg9[%c0_46, %c1] : memref<1x2xf32, #tpu.memory_space<smem>>
      %128 = vector.broadcast %126 : f32 to vector<8x128xf32>
      %129 = arith.mulf %122, %128 : vector<8x128xf32>
      %130 = vector.broadcast %127 : f32 to vector<8x128xf32>
      %131 = arith.mulf %125, %130 : vector<8x128xf32>
      %132 = arith.addf %129, %131 : vector<8x128xf32>
      %133 = arith.truncf %132 : vector<8x128xf32> to vector<8x128xbf16>
      %c0_47 = arith.constant 0 : index
      %c0_48 = arith.constant 0 : index
      %134 = vector.load %arg10[%c0_47, %c0_48] : memref<128x128xbf16, #tpu.memory_space<vmem>>, vector<128x128xbf16>
      %cst_49 = arith.constant dense<0.000000e+00> : vector<8x128xf32>
      %135 = tpu.matmul %133, %134, %cst_49 {dimension_numbers = #tpu.dot_dimension_numbers<[1], [0], [0], [1], [0, 0, 1, 1], [], []>} : vector<8x128xbf16>, vector<128x128xbf16>, vector<8x128xf32> -> vector<8x128xf32>
      %c0_50 = arith.constant 0 : index
      %c0_51 = arith.constant 0 : index
      %136 = vector.load %arg11[%c0_50, %c0_51] : memref<1x128xf32, #tpu.memory_space<vmem>>, vector<1x128xf32>
      %137 = vector.broadcast %136 : vector<1x128xf32> to vector<8x128xf32>
      %138 = arith.addf %135, %137 : vector<8x128xf32>
      %cst_52 = arith.constant 0.000000e+00 : f32
      %139 = vector.broadcast %cst_52 : f32 to vector<8x128xf32>
      %140 = arith.maximumf %138, %139 : vector<8x128xf32>
      %141 = arith.truncf %140 : vector<8x128xf32> to vector<8x128xbf16>
      %c0_53 = arith.constant 0 : index
      %c0_54 = arith.constant 0 : index
      %142 = vector.load %arg12[%c0_53, %c0_54] : memref<128x128xbf16, #tpu.memory_space<vmem>>, vector<128x128xbf16>
      %cst_55 = arith.constant dense<0.000000e+00> : vector<8x128xf32>
      %143 = tpu.matmul %141, %142, %cst_55 {dimension_numbers = #tpu.dot_dimension_numbers<[1], [0], [0], [1], [0, 0, 1, 1], [], []>} : vector<8x128xbf16>, vector<128x128xbf16>, vector<8x128xf32> -> vector<8x128xf32>
      %c0_56 = arith.constant 0 : index
      %c0_57 = arith.constant 0 : index
      %144 = vector.load %arg13[%c0_56, %c0_57] : memref<1x128xf32, #tpu.memory_space<vmem>>, vector<1x128xf32>
      %145 = vector.broadcast %144 : vector<1x128xf32> to vector<8x128xf32>
      %146 = arith.addf %143, %145 : vector<8x128xf32>
      %c0_58 = arith.constant 0 : index
      %c0_59 = arith.constant 0 : index
      %147 = vector.load %arg14[%c0_58, %c0_59] : memref<8x128xf32, #tpu.memory_space<vmem>>, vector<8x128xf32>
      tpu.vector_store %arg14[%c0_58, %c0_59], %146 {strides = array<i32>} : memref<8x128xf32, #tpu.memory_space<vmem>>, vector<8x128xf32>,
    } else {
    }
    return
  }
  func.func @transform_0(%arg0: i32) -> (i32, i32) {
    %c0_i32 = arith.constant 0 : i32
    %c0_i32_0 = arith.constant 0 : i32
    return %arg0, %c0_i32 : i32, i32
  }
  func.func @transform_1(%arg0: i32) -> (i32, i32) {
    %c0_i32 = arith.constant 0 : i32
    %c0_i32_0 = arith.constant 0 : i32
    %c0_i32_1 = arith.constant 0 : i32
    return %c0_i32, %c0_i32_0 : i32, i32
  }
  func.func @transform_2(%arg0: i32) -> (i32, i32) {
    %c0_i32 = arith.constant 0 : i32
    %c0_i32_0 = arith.constant 0 : i32
    %c0_i32_1 = arith.constant 0 : i32
    return %c0_i32, %c0_i32_0 : i32, i32
  }
  func.func @transform_3(%arg0: i32) -> (i32, i32) {
    %c0_i32 = arith.constant 0 : i32
    %c0_i32_0 = arith.constant 0 : i32
    %c0_i32_1 = arith.constant 0 : i32
    return %c0_i32, %c0_i32_0 : i32, i32
  }
  func.func @transform_4(%arg0: i32) -> (i32, i32) {
    %c0_i32 = arith.constant 0 : i32
    %c0_i32_0 = arith.constant 0 : i32
    %c0_i32_1 = arith.constant 0 : i32
    return %c0_i32, %c0_i32_0 : i32, i32
  }
  func.func @transform_5(%arg0: i32) -> (i32, i32) {
    %c0_i32 = arith.constant 0 : i32
    %c0_i32_0 = arith.constant 0 : i32
    %c0_i32_1 = arith.constant 0 : i32
    return %c0_i32, %c0_i32_0 : i32, i32
  }
  func.func @transform_6(%arg0: i32) -> (i32, i32) {
    %c0_i32 = arith.constant 0 : i32
    %c0_i32_0 = arith.constant 0 : i32
    %c0_i32_1 = arith.constant 0 : i32
    return %c0_i32, %c0_i32_0 : i32, i32
  }
  func.func @transform_7(%arg0: i32) -> (i32, i32) {
    %c0_i32 = arith.constant 0 : i32
    %c0_i32_0 = arith.constant 0 : i32
    %c0_i32_1 = arith.constant 0 : i32
    return %c0_i32, %c0_i32_0 : i32, i32
  }
  func.func @transform_8(%arg0: i32) -> (i32, i32) {
    %c0_i32 = arith.constant 0 : i32
    %c0_i32_0 = arith.constant 0 : i32
    %c0_i32_1 = arith.constant 0 : i32
    return %c0_i32, %c0_i32_0 : i32, i32
  }
  func.func @transform_9(%arg0: i32) -> (i32, i32) {
    %c0_i32 = arith.constant 0 : i32
    %c0_i32_0 = arith.constant 0 : i32
    %c0_i32_1 = arith.constant 0 : i32
    return %c0_i32, %c0_i32_0 : i32, i32
  }
  func.func @transform_10(%arg0: i32) -> (i32, i32) {
    %c0_i32 = arith.constant 0 : i32
    %c0_i32_0 = arith.constant 0 : i32
    %c0_i32_1 = arith.constant 0 : i32
    return %c0_i32, %c0_i32_0 : i32, i32
  }
  func.func @transform_11(%arg0: i32) -> (i32, i32) {
    %c0_i32 = arith.constant 0 : i32
    %c0_i32_0 = arith.constant 0 : i32
    %c0_i32_1 = arith.constant 0 : i32
    return %c0_i32, %c0_i32_0 : i32, i32
  }
  func.func @transform_12(%arg0: i32) -> (i32, i32) {
    %c0_i32 = arith.constant 0 : i32
    %c0_i32_0 = arith.constant 0 : i32
    %c0_i32_1 = arith.constant 0 : i32
    return %c0_i32, %c0_i32_0 : i32, i32
  }
  func.func @transform_13(%arg0: i32) -> (i32, i32) {
    %c0_i32 = arith.constant 0 : i32
    %c0_i32_0 = arith.constant 0 : i32
    %c0_i32_1 = arith.constant 0 : i32
    return %c0_i32, %c0_i32_0 : i32, i32
  }
}

module attributes {stable_mosaic.version = 11 : i64} {
  func.func @_fused_forward_kernel(%arg0: i32, %arg1: memref<8x128xi32, #tpu.memory_space<vmem>>, %arg2: memref<128x128xbf16, #tpu.memory_space<vmem>>, %arg3: memref<128x128xbf16, #tpu.memory_space<vmem>>, %arg4: memref<128x128xbf16, #tpu.memory_space<vmem>>, %arg5: memref<1x128xf32, #tpu.memory_space<vmem>>, %arg6: memref<128x128xbf16, #tpu.memory_space<vmem>>, %arg7: memref<1x128xf32, #tpu.memory_space<vmem>>, %arg8: memref<8x1xf32, #tpu.memory_space<vmem>>, %arg9: memref<1x2xf32, #tpu.memory_space<smem>>, %arg10: memref<128x128xbf16, #tpu.memory_space<vmem>>, %arg11: memref<1x128xf32, #tpu.memory_space<vmem>>, %arg12: memref<128x128xbf16, #tpu.memory_space<vmem>>, %arg13: memref<1x128xf32, #tpu.memory_space<vmem>>, %arg14: memref<8x128xf32, #tpu.memory_space<vmem>>, %arg15: memref<8x128xf32, #tpu.memory_space<vmem>>, %arg16: memref<8x128xf32, #tpu.memory_space<vmem>>) attributes {dimension_semantics = [#tpu.dimension_semantics<arbitrary>], iteration_bounds = array<i64: 1>, scalar_prefetch = 0 : i64, scratch_operands = 2 : i64, tpu.core_type = #tpu.core_type<tc>, window_params = [{transform_indices = @transform_0, window_bounds = array<i64: 8, 128>}, {pipeline_mode = #tpu.pipeline_mode<synchronous>, transform_indices = @transform_1, window_bounds = array<i64: 128, 128>}, {pipeline_mode = #tpu.pipeline_mode<synchronous>, transform_indices = @transform_2, window_bounds = array<i64: 128, 128>}, {pipeline_mode = #tpu.pipeline_mode<synchronous>, transform_indices = @transform_3, window_bounds = array<i64: 128, 128>}, {pipeline_mode = #tpu.pipeline_mode<synchronous>, transform_indices = @transform_4, window_bounds = array<i64: 1, 128>}, {pipeline_mode = #tpu.pipeline_mode<synchronous>, transform_indices = @transform_5, window_bounds = array<i64: 128, 128>}, {pipeline_mode = #tpu.pipeline_mode<synchronous>, transform_indices = @transform_6, window_bounds = array<i64: 1, 128>}, {pipeline_mode = #tpu.pipeline_mode<synchronous>, transform_indices = @transform_7, window_bounds = array<i64: 8, 1>}, {transform_indices = @transform_8, window_bounds = array<i64: 1, 2>}, {pipeline_mode = #tpu.pipeline_mode<synchronous>, transform_indices = @transform_9, window_bounds = array<i64: 128, 128>}, {pipeline_mode = #tpu.pipeline_mode<synchronous>, transform_indices = @transform_10, window_bounds = array<i64: 1, 128>}, {pipeline_mode = #tpu.pipeline_mode<synchronous>, transform_indices = @transform_11, window_bounds = array<i64: 128, 128>}, {pipeline_mode = #tpu.pipeline_mode<synchronous>, transform_indices = @transform_12, window_bounds = array<i64: 1, 128>}, {pipeline_mode = #tpu.pipeline_mode<synchronous>, transform_indices = @transform_13, window_bounds = array<i64: 8, 128>}]} {
    %c0_i32 = arith.constant 0 : i32
    %0 = arith.cmpi eq, %arg0, %c0_i32 : i32
    %1 = arith.extui %0 : i1 to i32
    %c0_i32_0 = arith.constant 0 : i32
    %2 = arith.cmpi ne, %1, %c0_i32_0 : i32
    scf.if %2 {
      %cst_38 = arith.constant 0.000000e+00 : f32
      %119 = vector.broadcast %cst_38 : f32 to vector<8x128xf32>
      %c0_39 = arith.constant 0 : index
      %c0_40 = arith.constant 0 : index
      %120 = vector.load %arg15[%c0_39, %c0_40] : memref<8x128xf32, #tpu.memory_space<vmem>>, vector<8x128xf32>
      tpu.vector_store %arg15[%c0_39, %c0_40], %119 {strides = array<i32>} : memref<8x128xf32, #tpu.memory_space<vmem>>, vector<8x128xf32>,
      %cst_41 = arith.constant 0.000000e+00 : f32
      %121 = vector.broadcast %cst_41 : f32 to vector<8x128xf32>
      %c0_42 = arith.constant 0 : index
      %c0_43 = arith.constant 0 : index
      %122 = vector.load %arg16[%c0_42, %c0_43] : memref<8x128xf32, #tpu.memory_space<vmem>>, vector<8x128xf32>
      tpu.vector_store %arg16[%c0_42, %c0_43], %121 {strides = array<i32>} : memref<8x128xf32, #tpu.memory_space<vmem>>, vector<8x128xf32>,
    } else {
    }
    %c0 = arith.constant 0 : index
    %c0_1 = arith.constant 0 : index
    %3 = vector.load %arg1[%c0, %c0_1] : memref<8x128xi32, #tpu.memory_space<vmem>>, vector<8x6xi32>
    %c0_2 = arith.constant 0 : index
    %c6 = arith.constant 6 : index
    %4 = vector.load %arg1[%c0_2, %c6] : memref<8x128xi32, #tpu.memory_space<vmem>>, vector<8x4xi32>
    %c0_3 = arith.constant 0 : index
    %c10 = arith.constant 10 : index
    %5 = vector.load %arg1[%c0_3, %c10] : memref<8x128xi32, #tpu.memory_space<vmem>>, vector<8x1xi32>
    %c0_4 = arith.constant 0 : index
    %c11 = arith.constant 11 : index
    %6 = vector.load %arg1[%c0_4, %c11] : memref<8x128xi32, #tpu.memory_space<vmem>>, vector<8x1xi32>
    %c0_5 = arith.constant 0 : index
    %c12 = arith.constant 12 : index
    %7 = vector.load %arg1[%c0_5, %c12] : memref<8x128xi32, #tpu.memory_space<vmem>>, vector<8x1xi32>
    %8 = tpu.iota {dimensions = array<i32: 1>} : vector<8x6xi32>
    %9 = vector.broadcast %5 : vector<8x1xi32> to vector<8x6xi32>
    %10 = arith.cmpi slt, %8, %9 : vector<8x6xi32>
    %c128_i32 = arith.constant 128 : i32
    %11 = vector.broadcast %c128_i32 : i32 to vector<8x6xi32>
    %12 = arith.select %10, %3, %11 : vector<8x6xi1>, vector<8x6xi32>
    %13 = tpu.iota {dimensions = array<i32: 1>} : vector<8x128xi32>
    %c0_i32_6 = arith.constant 0 : i32
    %14 = vector.broadcast %c0_i32_6 : i32 to vector<8x128xi32>
    %15 = vector.extract_strided_slice %12 {offsets = [0, 0], sizes = [8, 1], strides = [1, 1]} : vector<8x6xi32> to vector<8x1xi32>
    %16 = vector.broadcast %15 : vector<8x1xi32> to vector<8x128xi32>
    %17 = arith.cmpi eq, %13, %16 : vector<8x128xi32>
    %18 = arith.extui %17 : vector<8x128xi1> to vector<8x128xi32>
    %19 = arith.addi %14, %18 : vector<8x128xi32>
    %20 = vector.extract_strided_slice %12 {offsets = [0, 1], sizes = [8, 1], strides = [1, 1]} : vector<8x6xi32> to vector<8x1xi32>
    %21 = vector.broadcast %20 : vector<8x1xi32> to vector<8x128xi32>
    %22 = arith.cmpi eq, %13, %21 : vector<8x128xi32>
    %23 = arith.extui %22 : vector<8x128xi1> to vector<8x128xi32>
    %24 = arith.addi %19, %23 : vector<8x128xi32>
    %25 = vector.extract_strided_slice %12 {offsets = [0, 2], sizes = [8, 1], strides = [1, 1]} : vector<8x6xi32> to vector<8x1xi32>
    %26 = vector.broadcast %25 : vector<8x1xi32> to vector<8x128xi32>
    %27 = arith.cmpi eq, %13, %26 : vector<8x128xi32>
    %28 = arith.extui %27 : vector<8x128xi1> to vector<8x128xi32>
    %29 = arith.addi %24, %28 : vector<8x128xi32>
    %30 = vector.extract_strided_slice %12 {offsets = [0, 3], sizes = [8, 1], strides = [1, 1]} : vector<8x6xi32> to vector<8x1xi32>
    %31 = vector.broadcast %30 : vector<8x1xi32> to vector<8x128xi32>
    %32 = arith.cmpi eq, %13, %31 : vector<8x128xi32>
    %33 = arith.extui %32 : vector<8x128xi1> to vector<8x128xi32>
    %34 = arith.addi %29, %33 : vector<8x128xi32>
    %35 = vector.extract_strided_slice %12 {offsets = [0, 4], sizes = [8, 1], strides = [1, 1]} : vector<8x6xi32> to vector<8x1xi32>
    %36 = vector.broadcast %35 : vector<8x1xi32> to vector<8x128xi32>
    %37 = arith.cmpi eq, %13, %36 : vector<8x128xi32>
    %38 = arith.extui %37 : vector<8x128xi1> to vector<8x128xi32>
    %39 = arith.addi %34, %38 : vector<8x128xi32>
    %40 = vector.extract_strided_slice %12 {offsets = [0, 5], sizes = [8, 1], strides = [1, 1]} : vector<8x6xi32> to vector<8x1xi32>
    %41 = vector.broadcast %40 : vector<8x1xi32> to vector<8x128xi32>
    %42 = arith.cmpi eq, %13, %41 : vector<8x128xi32>
    %43 = arith.extui %42 : vector<8x128xi1> to vector<8x128xi32>
    %44 = arith.addi %39, %43 : vector<8x128xi32>
    %45 = arith.sitofp %44 : vector<8x128xi32> to vector<8x128xf32>
    %46 = arith.sitofp %5 : vector<8x1xi32> to vector<8x1xf32>
    %47 = tpu.reciprocal %46 {approx = true} : vector<8x1xf32> -> vector<8x1xf32>
    %48 = vector.broadcast %47 : vector<8x1xf32> to vector<8x128xf32>
    %49 = arith.mulf %45, %48 : vector<8x128xf32>
    %50 = arith.truncf %49 : vector<8x128xf32> to vector<8x128xbf16>
    %c0_7 = arith.constant 0 : index
    %c0_8 = arith.constant 0 : index
    %51 = vector.load %arg2[%c0_7, %c0_8] : memref<128x128xbf16, #tpu.memory_space<vmem>>, vector<128x128xbf16>
    %cst = arith.constant dense<0.000000e+00> : vector<8x128xf32>
    %52 = tpu.matmul %50, %51, %cst {dimension_numbers = #tpu.dot_dimension_numbers<[1], [0], [0], [1], [0, 0, 1, 1], [], []>} : vector<8x128xbf16>, vector<128x128xbf16>, vector<8x128xf32> -> vector<8x128xf32>
    %53 = arith.truncf %52 : vector<8x128xf32> to vector<8x128xbf16>
    %c0_9 = arith.constant 0 : index
    %c0_10 = arith.constant 0 : index
    %54 = vector.load %arg4[%c0_9, %c0_10] : memref<128x128xbf16, #tpu.memory_space<vmem>>, vector<128x128xbf16>
    %cst_11 = arith.constant dense<0.000000e+00> : vector<8x128xf32>
    %55 = tpu.matmul %53, %54, %cst_11 {dimension_numbers = #tpu.dot_dimension_numbers<[1], [0], [0], [1], [0, 0, 1, 1], [], []>} : vector<8x128xbf16>, vector<128x128xbf16>, vector<8x128xf32> -> vector<8x128xf32>
    %c0_12 = arith.constant 0 : index
    %c0_13 = arith.constant 0 : index
    %56 = vector.load %arg5[%c0_12, %c0_13] : memref<1x128xf32, #tpu.memory_space<vmem>>, vector<1x128xf32>
    %57 = vector.broadcast %56 : vector<1x128xf32> to vector<8x128xf32>
    %58 = arith.addf %55, %57 : vector<8x128xf32>
    %cst_14 = arith.constant 0.000000e+00 : f32
    %59 = vector.broadcast %cst_14 : f32 to vector<8x128xf32>
    %60 = arith.maximumf %58, %59 : vector<8x128xf32>
    %61 = tpu.iota {dimensions = array<i32: 1>} : vector<8x4xi32>
    %62 = vector.broadcast %6 : vector<8x1xi32> to vector<8x4xi32>
    %63 = arith.cmpi slt, %61, %62 : vector<8x4xi32>
    %c128_i32_15 = arith.constant 128 : i32
    %64 = vector.broadcast %c128_i32_15 : i32 to vector<8x4xi32>
    %65 = arith.select %63, %4, %64 : vector<8x4xi1>, vector<8x4xi32>
    %66 = tpu.iota {dimensions = array<i32: 1>} : vector<8x128xi32>
    %c0_i32_16 = arith.constant 0 : i32
    %67 = vector.broadcast %c0_i32_16 : i32 to vector<8x128xi32>
    %68 = vector.extract_strided_slice %65 {offsets = [0, 0], sizes = [8, 1], strides = [1, 1]} : vector<8x4xi32> to vector<8x1xi32>
    %69 = vector.broadcast %68 : vector<8x1xi32> to vector<8x128xi32>
    %70 = arith.cmpi eq, %66, %69 : vector<8x128xi32>
    %71 = arith.extui %70 : vector<8x128xi1> to vector<8x128xi32>
    %72 = arith.addi %67, %71 : vector<8x128xi32>
    %73 = vector.extract_strided_slice %65 {offsets = [0, 1], sizes = [8, 1], strides = [1, 1]} : vector<8x4xi32> to vector<8x1xi32>
    %74 = vector.broadcast %73 : vector<8x1xi32> to vector<8x128xi32>
    %75 = arith.cmpi eq, %66, %74 : vector<8x128xi32>
    %76 = arith.extui %75 : vector<8x128xi1> to vector<8x128xi32>
    %77 = arith.addi %72, %76 : vector<8x128xi32>
    %78 = vector.extract_strided_slice %65 {offsets = [0, 2], sizes = [8, 1], strides = [1, 1]} : vector<8x4xi32> to vector<8x1xi32>
    %79 = vector.broadcast %78 : vector<8x1xi32> to vector<8x128xi32>
    %80 = arith.cmpi eq, %66, %79 : vector<8x128xi32>
    %81 = arith.extui %80 : vector<8x128xi1> to vector<8x128xi32>
    %82 = arith.addi %77, %81 : vector<8x128xi32>
    %83 = vector.extract_strided_slice %65 {offsets = [0, 3], sizes = [8, 1], strides = [1, 1]} : vector<8x4xi32> to vector<8x1xi32>
    %84 = vector.broadcast %83 : vector<8x1xi32> to vector<8x128xi32>
    %85 = arith.cmpi eq, %66, %84 : vector<8x128xi32>
    %86 = arith.extui %85 : vector<8x128xi1> to vector<8x128xi32>
    %87 = arith.addi %82, %86 : vector<8x128xi32>
    %88 = arith.sitofp %87 : vector<8x128xi32> to vector<8x128xf32>
    %89 = arith.truncf %88 : vector<8x128xf32> to vector<8x128xbf16>
    %c0_17 = arith.constant 0 : index
    %c0_18 = arith.constant 0 : index
    %90 = vector.load %arg3[%c0_17, %c0_18] : memref<128x128xbf16, #tpu.memory_space<vmem>>, vector<128x128xbf16>
    %cst_19 = arith.constant dense<0.000000e+00> : vector<8x128xf32>
    %91 = tpu.matmul %89, %90, %cst_19 {dimension_numbers = #tpu.dot_dimension_numbers<[1], [0], [0], [1], [0, 0, 1, 1], [], []>} : vector<8x128xbf16>, vector<128x128xbf16>, vector<8x128xf32> -> vector<8x128xf32>
    %92 = arith.truncf %91 : vector<8x128xf32> to vector<8x128xbf16>
    %c0_20 = arith.constant 0 : index
    %c0_21 = arith.constant 0 : index
    %93 = vector.load %arg6[%c0_20, %c0_21] : memref<128x128xbf16, #tpu.memory_space<vmem>>, vector<128x128xbf16>
    %cst_22 = arith.constant dense<0.000000e+00> : vector<8x128xf32>
    %94 = tpu.matmul %92, %93, %cst_22 {dimension_numbers = #tpu.dot_dimension_numbers<[1], [0], [0], [1], [0, 0, 1, 1], [], []>} : vector<8x128xbf16>, vector<128x128xbf16>, vector<8x128xf32> -> vector<8x128xf32>
    %c0_23 = arith.constant 0 : index
    %c0_24 = arith.constant 0 : index
    %95 = vector.load %arg7[%c0_23, %c0_24] : memref<1x128xf32, #tpu.memory_space<vmem>>, vector<1x128xf32>
    %96 = vector.broadcast %95 : vector<1x128xf32> to vector<8x128xf32>
    %97 = arith.addf %94, %96 : vector<8x128xf32>
    %cst_25 = arith.constant 0.000000e+00 : f32
    %98 = vector.broadcast %cst_25 : f32 to vector<8x128xf32>
    %99 = arith.maximumf %97, %98 : vector<8x128xf32>
    %100 = tpu.iota {dimensions = array<i32: 1>} : vector<8x8xi32>
    %101 = vector.broadcast %7 : vector<8x1xi32> to vector<8x8xi32>
    %102 = arith.cmpi eq, %101, %100 : vector<8x8xi32>
    %103 = arith.extui %102 : vector<8x8xi1> to vector<8x8xi32>
    %104 = arith.sitofp %103 : vector<8x8xi32> to vector<8x8xf32>
    %105 = arith.truncf %104 : vector<8x8xf32> to vector<8x8xbf16>
    %c0_26 = arith.constant 0 : index
    %c0_27 = arith.constant 0 : index
    %106 = vector.load %arg15[%c0_26, %c0_27] : memref<8x128xf32, #tpu.memory_space<vmem>>, vector<8x128xf32>
    %107 = arith.truncf %60 : vector<8x128xf32> to vector<8x128xbf16>
    "tpu.trace_start"() <{level = 10 : i32, message = "nb,nh->bh"}> : () -> ()
    %cst_28 = arith.constant dense<0.000000e+00> : vector<8x128xf32>
    %108 = tpu.matmul %105, %107, %cst_28 {dimension_numbers = #tpu.dot_dimension_numbers<[0], [0], [1], [1], [0, 1, 1, 1], [], []>} : vector<8x8xbf16>, vector<8x128xbf16>, vector<8x128xf32> -> vector<8x128xf32>
    "tpu.trace_stop"() : () -> ()
    %109 = arith.addf %106, %108 : vector<8x128xf32>
    %c0_29 = arith.constant 0 : index
    %c0_30 = arith.constant 0 : index
    %110 = vector.load %arg15[%c0_29, %c0_30] : memref<8x128xf32, #tpu.memory_space<vmem>>, vector<8x128xf32>
    tpu.vector_store %arg15[%c0_29, %c0_30], %109 {strides = array<i32>} : memref<8x128xf32, #tpu.memory_space<vmem>>, vector<8x128xf32>,
    %c0_31 = arith.constant 0 : index
    %c0_32 = arith.constant 0 : index
    %111 = vector.load %arg16[%c0_31, %c0_32] : memref<8x128xf32, #tpu.memory_space<vmem>>, vector<8x128xf32>
    %112 = arith.truncf %99 : vector<8x128xf32> to vector<8x128xbf16>
    "tpu.trace_start"() <{level = 10 : i32, message = "nb,nh->bh"}> : () -> ()
    %cst_33 = arith.constant dense<0.000000e+00> : vector<8x128xf32>
    %113 = tpu.matmul %105, %112, %cst_33 {dimension_numbers = #tpu.dot_dimension_numbers<[0], [0], [1], [1], [0, 1, 1, 1], [], []>} : vector<8x8xbf16>, vector<8x128xbf16>, vector<8x128xf32> -> vector<8x128xf32>
    "tpu.trace_stop"() : () -> ()
    %114 = arith.addf %111, %113 : vector<8x128xf32>
    %c0_34 = arith.constant 0 : index
    %c0_35 = arith.constant 0 : index
    %115 = vector.load %arg16[%c0_34, %c0_35] : memref<8x128xf32, #tpu.memory_space<vmem>>, vector<8x128xf32>
    tpu.vector_store %arg16[%c0_34, %c0_35], %114 {strides = array<i32>} : memref<8x128xf32, #tpu.memory_space<vmem>>, vector<8x128xf32>,
    %c0_i32_36 = arith.constant 0 : i32
    %116 = arith.cmpi eq, %arg0, %c0_i32_36 : i32
    %117 = arith.extui %116 : i1 to i32
    %c0_i32_37 = arith.constant 0 : i32
    %118 = arith.cmpi ne, %117, %c0_i32_37 : i32
    scf.if %118 {
      %c0_38 = arith.constant 0 : index
      %c0_39 = arith.constant 0 : index
      %119 = vector.load %arg8[%c0_38, %c0_39] : memref<8x1xf32, #tpu.memory_space<vmem>>, vector<8x1xf32>
      %c0_40 = arith.constant 0 : index
      %c0_41 = arith.constant 0 : index
      %120 = vector.load %arg15[%c0_40, %c0_41] : memref<8x128xf32, #tpu.memory_space<vmem>>, vector<8x128xf32>
      %121 = vector.broadcast %119 : vector<8x1xf32> to vector<8x128xf32>
      %122 = arith.mulf %120, %121 : vector<8x128xf32>
      %c0_42 = arith.constant 0 : index
      %c0_43 = arith.constant 0 : index
      %123 = vector.load %arg16[%c0_42, %c0_43] : memref<8x128xf32, #tpu.memory_space<vmem>>, vector<8x128xf32>
      %124 = vector.broadcast %119 : vector<8x1xf32> to vector<8x128xf32>
      %125 = arith.mulf %123, %124 : vector<8x128xf32>
      %c0_44 = arith.constant 0 : index
      %c0_45 = arith.constant 0 : index
      %126 = memref.load %arg9[%c0_44, %c0_45] : memref<1x2xf32, #tpu.memory_space<smem>>
      %c0_46 = arith.constant 0 : index
      %c1 = arith.constant 1 : index
      %127 = memref.load %arg9[%c0_46, %c1] : memref<1x2xf32, #tpu.memory_space<smem>>
      %128 = vector.broadcast %126 : f32 to vector<8x128xf32>
      %129 = arith.mulf %122, %128 : vector<8x128xf32>
      %130 = vector.broadcast %127 : f32 to vector<8x128xf32>
      %131 = arith.mulf %125, %130 : vector<8x128xf32>
      %132 = arith.addf %129, %131 : vector<8x128xf32>
      %133 = arith.truncf %132 : vector<8x128xf32> to vector<8x128xbf16>
      %c0_47 = arith.constant 0 : index
      %c0_48 = arith.constant 0 : index
      %134 = vector.load %arg10[%c0_47, %c0_48] : memref<128x128xbf16, #tpu.memory_space<vmem>>, vector<128x128xbf16>
      %cst_49 = arith.constant dense<0.000000e+00> : vector<8x128xf32>
      %135 = tpu.matmul %133, %134, %cst_49 {dimension_numbers = #tpu.dot_dimension_numbers<[1], [0], [0], [1], [0, 0, 1, 1], [], []>} : vector<8x128xbf16>, vector<128x128xbf16>, vector<8x128xf32> -> vector<8x128xf32>
      %c0_50 = arith.constant 0 : index
      %c0_51 = arith.constant 0 : index
      %136 = vector.load %arg11[%c0_50, %c0_51] : memref<1x128xf32, #tpu.memory_space<vmem>>, vector<1x128xf32>
      %137 = vector.broadcast %136 : vector<1x128xf32> to vector<8x128xf32>
      %138 = arith.addf %135, %137 : vector<8x128xf32>
      %cst_52 = arith.constant 0.000000e+00 : f32
      %139 = vector.broadcast %cst_52 : f32 to vector<8x128xf32>
      %140 = arith.maximumf %138, %139 : vector<8x128xf32>
      %141 = arith.truncf %140 : vector<8x128xf32> to vector<8x128xbf16>
      %c0_53 = arith.constant 0 : index
      %c0_54 = arith.constant 0 : index
      %142 = vector.load %arg12[%c0_53, %c0_54] : memref<128x128xbf16, #tpu.memory_space<vmem>>, vector<128x128xbf16>
      %cst_55 = arith.constant dense<0.000000e+00> : vector<8x128xf32>
      %143 = tpu.matmul %141, %142, %cst_55 {dimension_numbers = #tpu.dot_dimension_numbers<[1], [0], [0], [1], [0, 0, 1, 1], [], []>} : vector<8x128xbf16>, vector<128x128xbf16>, vector<8x128xf32> -> vector<8x128xf32>
      %c0_56 = arith.constant 0 : index
      %c0_57 = arith.constant 0 : index
      %144 = vector.load %arg13[%c0_56, %c0_57] : memref<1x128xf32, #tpu.memory_space<vmem>>, vector<1x128xf32>
      %145 = vector.broadcast %144 : vector<1x128xf32> to vector<8x128xf32>
      %146 = arith.addf %143, %145 : vector<8x128xf32>
      %c0_58 = arith.constant 0 : index
      %c0_59 = arith.constant 0 : index
      %147 = vector.load %arg14[%c0_58, %c0_59] : memref<8x128xf32, #tpu.memory_space<vmem>>, vector<8x128xf32>
      tpu.vector_store %arg14[%c0_58, %c0_59], %146 {strides = array<i32>} : memref<8x128xf32, #tpu.memory_space<vmem>>, vector<8x128xf32>,
    } else {
    }
    return
  }
  func.func @transform_0(%arg0: i32) -> (i32, i32) {
    %c0_i32 = arith.constant 0 : i32
    %c0_i32_0 = arith.constant 0 : i32
    return %arg0, %c0_i32 : i32, i32
  }
  func.func @transform_1(%arg0: i32) -> (i32, i32) {
    %c0_i32 = arith.constant 0 : i32
    %c0_i32_0 = arith.constant 0 : i32
    %c0_i32_1 = arith.constant 0 : i32
    return %c0_i32, %c0_i32_0 : i32, i32
  }
  func.func @transform_2(%arg0: i32) -> (i32, i32) {
    %c0_i32 = arith.constant 0 : i32
    %c0_i32_0 = arith.constant 0 : i32
    %c0_i32_1 = arith.constant 0 : i32
    return %c0_i32, %c0_i32_0 : i32, i32
  }
  func.func @transform_3(%arg0: i32) -> (i32, i32) {
    %c0_i32 = arith.constant 0 : i32
    %c0_i32_0 = arith.constant 0 : i32
    %c0_i32_1 = arith.constant 0 : i32
    return %c0_i32, %c0_i32_0 : i32, i32
  }
  func.func @transform_4(%arg0: i32) -> (i32, i32) {
    %c0_i32 = arith.constant 0 : i32
    %c0_i32_0 = arith.constant 0 : i32
    %c0_i32_1 = arith.constant 0 : i32
    return %c0_i32, %c0_i32_0 : i32, i32
  }
  func.func @transform_5(%arg0: i32) -> (i32, i32) {
    %c0_i32 = arith.constant 0 : i32
    %c0_i32_0 = arith.constant 0 : i32
    %c0_i32_1 = arith.constant 0 : i32
    return %c0_i32, %c0_i32_0 : i32, i32
  }
  func.func @transform_6(%arg0: i32) -> (i32, i32) {
    %c0_i32 = arith.constant 0 : i32
    %c0_i32_0 = arith.constant 0 : i32
    %c0_i32_1 = arith.constant 0 : i32
    return %c0_i32, %c0_i32_0 : i32, i32
  }
  func.func @transform_7(%arg0: i32) -> (i32, i32) {
    %c0_i32 = arith.constant 0 : i32
    %c0_i32_0 = arith.constant 0 : i32
    %c0_i32_1 = arith.constant 0 : i32
    return %c0_i32, %c0_i32_0 : i32, i32
  }
  func.func @transform_8(%arg0: i32) -> (i32, i32) {
    %c0_i32 = arith.constant 0 : i32
    %c0_i32_0 = arith.constant 0 : i32
    %c0_i32_1 = arith.constant 0 : i32
    return %c0_i32, %c0_i32_0 : i32, i32
  }
  func.func @transform_9(%arg0: i32) -> (i32, i32) {
    %c0_i32 = arith.constant 0 : i32
    %c0_i32_0 = arith.constant 0 : i32
    %c0_i32_1 = arith.constant 0 : i32
    return %c0_i32, %c0_i32_0 : i32, i32
  }
  func.func @transform_10(%arg0: i32) -> (i32, i32) {
    %c0_i32 = arith.constant 0 : i32
    %c0_i32_0 = arith.constant 0 : i32
    %c0_i32_1 = arith.constant 0 : i32
    return %c0_i32, %c0_i32_0 : i32, i32
  }
  func.func @transform_11(%arg0: i32) -> (i32, i32) {
    %c0_i32 = arith.constant 0 : i32
    %c0_i32_0 = arith.constant 0 : i32
    %c0_i32_1 = arith.constant 0 : i32
    return %c0_i32, %c0_i32_0 : i32, i32
  }
  func.func @transform_12(%arg0: i32) -> (i32, i32) {
    %c0_i32 = arith.constant 0 : i32
    %c0_i32_0 = arith.constant 0 : i32
    %c0_i32_1 = arith.constant 0 : i32
    return %c0_i32, %c0_i32_0 : i32, i32
  }
  func.func @transform_13(%arg0: i32) -> (i32, i32) {
    %c0_i32 = arith.constant 0 : i32
    %c0_i32_0 = arith.constant 0 : i32
    %c0_i32_1 = arith.constant 0 : i32
    return %c0_i32, %c0_i32_0 : i32, i32
  }
}

</mosaic_0001>

<bundles_post_ra>
// kernel: tpu_custom_call.1
= control target key start
LH: loop header
LB: loop body
LE: loop exit
PB: predicated region body
PF: predicated region fallthrough
CT: control target
= control target key end

     0   :  { %18 = vsyncpa [#allocation5], 0  ;;  %s1506_s0 = inlined_call_operand.vmem [shape: s32[8,128], index: 0, kind: input, shape index: {}]   ;;  %s1507_s1 = inlined_call_operand.hbm [shape: bf16[128,128], index: 1, kind: input, shape index: {}]   ;;  %s1508_s2 = inlined_call_operand.hbm [shape: bf16[128,128], index: 2, kind: input, shape index: {}]   ;;  %s1509_s3 = inlined_call_operand.hbm [shape: bf16[128,128], index: 3, kind: input, shape index: {}]   ;;  %s1510_s4 = inlined_call_operand.vmem [shape: f32[1,128], index: 4, kind: input, shape index: {}]   ;;  %s1511_s5 = inlined_call_operand.hbm [shape: bf16[128,128], index: 5, kind: input, shape index: {}]   ;;  %s1512_s6 = inlined_call_operand.vmem [shape: f32[1,128], index: 6, kind: input, shape index: {}]   ;;  %s1513_s7 = inlined_call_operand.vmem [shape: f32[8,1], index: 7, kind: input, shape index: {}]   ;;  %s1514_s8 = inlined_call_operand.vmem [shape: f32[1,2], index: 8, kind: input, shape index: {}]   ;;  %s1515_s9 = inlined_call_operand.hbm [shape: bf16[128,128], index: 9, kind: input, shape index: {}]   ;;  %s1516_s10 = inlined_call_operand.vmem [shape: f32[1,128], index: 10, kind: input, shape index: {}]   ;;  %s1517_s11 = inlined_call_operand.hbm [shape: bf16[128,128], index: 11, kind: input, shape index: {}]   ;;  %s1518_s12 = inlined_call_operand.vmem [shape: f32[1,128], index: 12, kind: input, shape index: {}]   ;;  %s1519_s13 = inlined_call_operand.hbm [shape: f32[8,128], index: 13, kind: output, shape index: {}]  }
   0x1   :  { %19 = vsyncpa [#allocation9], 0 }
   0x2   :  { %20 = vsyncpa [#allocation12], 0 }
   0x3   :  { %21 = vsyncpa [#allocation7], 0 }
   0x4   :  { %22 = vsyncpa [#allocation16], 0 }
   0x5   :  { %23 = vsyncpa [#allocation6], 0  ;;  %s43_s27 = sshll.u32 %s1508_s2, 4  ;;  %s1318_s28 = smov [#allocation8]   ;;  %s44_s27 = int_to_ptr.hbm [resolvable:$true] %s43_s27 }
   0x6   :  { %s45_s29 = sshll.u32 %s1318_s28, 4  ;;  %s71_s15 = sshll.u32 %s1511_s5, 4  ;;  %s46_s29 = int_to_ptr.vmem [resolvable:$true] %s45_s29  ;;  %s72_s15 = int_to_ptr.hbm [resolvable:$true] %s71_s15 }
   0x7   :  { %s1319_s16 = smov 64   ;;  %s1320_s17 = smov 4  }
   0x8   :  { %51 = dma.hbm_to_vmem [thread:$0]  %s44_s27, 1024, %s46_s29, [#allocation9], %s1319_s16, %s1319_s16, %s1320_s17  }
   0x9   :  { %s1321_s18 = smov [#allocation11]   ;;  %s30_s2 = sshll.u32 %s1507_s1, 4  ;;  %s31_s2 = int_to_ptr.hbm [resolvable:$true] %s30_s2 }
   0xa   :  { %s73_s19 = sshll.u32 %s1321_s18, 4  ;;  %s56_s23 = sshll.u32 %s1509_s3, 4  ;;  %s74_s19 = int_to_ptr.vmem [resolvable:$true] %s73_s19  ;;  %s57_s23 = int_to_ptr.hbm [resolvable:$true] %s56_s23 }
   0xb   :  { %79 = dma.hbm_to_vmem [thread:$0]  %s72_s15, 1024, %s74_s19, [#allocation12], %s1319_s16, %s1319_s16, %s1320_s17  }
   0xc   :  { %s1322_s24 = smov [#allocation4]   ;;  %s1323_s26 = smov [#allocation10]  }
   0xd   :  { %s32_s25 = sshll.u32 %s1322_s24, 4  ;;  %s58_s1 = sshll.u32 %s1323_s26, 4  ;;  %s33_s25 = int_to_ptr.vmem [resolvable:$true] %s32_s25  ;;  %s59_s1 = int_to_ptr.vmem [resolvable:$true] %s58_s1 }
   0xe   :  { %38 = dma.hbm_to_vmem [thread:$0]  %s31_s2, 1024, %s33_s25, [#allocation5], %s1319_s16, %s1319_s16, %s1320_s17  }
   0xf   :  { %s89_s29 = sshll.u32 %s1514_s8, 4  ;;  %s97_s14 = sshll.u32 %s1515_s9, 4  ;;  %s90_s29 = int_to_ptr.vmem [resolvable:$true] %s89_s29  ;;  %s98_s14 = int_to_ptr.hbm [resolvable:$true] %s97_s14 }
  0x10   :  { %64 = dma.hbm_to_vmem [thread:$0]  %s57_s23, 1024, %s59_s1, [#allocation9], %s1319_s16, %s1319_s16, %s1320_s17  }
  0x11   :  { %s1324_s15 = smov [#allocation13]   ;;  %s1325_s18 = smov [#allocation14]  }
  0x12   :  { %92 = dma.vmem_to_smem %s90_s29, 16, %s1324_s15, [#allocation7]  }
  0x13   :  { %s99_s19 = sshll.u32 %s1325_s18, 4  ;;  %s112_s2 = sshll.u32 %s1517_s11, 4  ;;  %s100_s19 = int_to_ptr.vmem [resolvable:$true] %s99_s19  ;;  %s113_s2 = int_to_ptr.hbm [resolvable:$true] %s112_s2 }
  0x14   :  { %105 = dma.hbm_to_vmem [thread:$0]  %s98_s14, 1024, %s100_s19, [#allocation12], %s1319_s16, %s1319_s16, %s1320_s17  }
  0x15   :  { %s1326_s8 = smov [#allocation15]  }
  0x16   :  { %s114_s5 = sshll.u32 %s1326_s8, 4  ;;  %s115_s5 = int_to_ptr.vmem [resolvable:$true] %s114_s5 }
  0x17   :  { %120 = dma.hbm_to_vmem [thread:$0]  %s113_s2, 1024, %s115_s5, [#allocation16], %s1319_s16, %s1319_s16, %s1320_s17  }
  0x18   :  { %1304 = dma.done.wait [#allocation5], 1024  }
  0x19   :  { %1305 = vsyncadd [#allocation5], 4294966272 }
  0x1a   :  { %1306 = dma.done.wait [#allocation9], 2048  }
  0x1b   :  { %1307 = vsyncadd [#allocation9], 4294965248 }
  0x1c   :  { %1308 = dma.done.wait [#allocation12], 1024  }
  0x1d   :  { %1309 = vsyncadd [#allocation12], 4294966272 }
  0x1e   :  { %1310 = dma.done.wait [#allocation7], 16  }
  0x1f   :  { %1311 = vsyncadd [#allocation7], 4294967280 }
  0x20   :  { %1312 = dma.done.wait [#allocation12], 1024  }
  0x21   :  { %1313 = vsyncadd [#allocation12], 4294966272 }
  0x22   :  { %1314 = dma.done.wait [#allocation16], 1024  }
  0x23   :  { %1315 = vsyncadd [#allocation16], 4294966272 }
  0x24   :  { %151 = sfence }
  0x25   :  { %v1451_v0 = vld [vmem:[%s1506_s0] sm:$0xff]  ;;  %v1327_v1 = vmov 11   ;;  %v1328_v2 = vmov 10   ;;  %s1329_s16 = smov 122   ;;  %v1330_v3 = vmov 1   ;;  %v1331_v4 = vmov 0  }
  0x26   :  { %1104 = vset.pattern.permute.xlu0 %v1327_v1  ;;  %1105 = vset.pattern.permute.xlu1 %v1328_v2  ;;  %v1332_v5 = vmov 3   ;;  %v160_v6 = vlaneseq  ;;  %v1333_v13 = vmov 4   ;;  %v1334_v14 = vmov 2   ;;  %v1058_v18 = vld [vmem:[#allocation8 + $0x38] sm:$0xff]  ;;  %v1057_v19 = vld [vmem:[#allocation8 + $0x30] sm:$0xff]  ;;  %v1056_v20 = vld [vmem:[#allocation8 + $0x28] sm:$0xff] }
  0x27   :  { %373 = vperm.xlu0 %1104, %v1451_v0   ;;  %163 = vperm.xlu1 %1105, %v1451_v0   ;;  %v203_v15 = vcvt.s32.f32 %v1451_v0  ;;  %v1335_v16 = vmov 5   ;;  %v1055_v21 = vld [vmem:[#allocation8 + $0x20] sm:$0xff]  ;;  %v1054_v22 = vld [vmem:[#allocation8 + $0x18] sm:$0xff]  ;;  %v1053_v23 = vld [vmem:[#allocation8 + $0x10] sm:$0xff]  ;;  %v1336_v28 = vmov 12   ;;  %vm593_vm13 = vcmask 1043456  }
  0x28   :  { %1107 = vset.pattern.permute.xlu2 %v1330_v3  ;;  %v1457_v8 = vand.u32 127, %v160_v6  ;;  %468 = vmatpush.bf16.msra.mxu2 %v1058_v18  ;;  %v1042_v24 = vld [vmem:[#allocation4 + $0x38] sm:$0xff]  ;;  %v1052_v25 = vld [vmem:[#allocation8 + $0x8] sm:$0xff]  ;;  %v1041_v26 = vld [vmem:[#allocation4 + $0x30] sm:$0xff]  ;;  %v1337_v18 = vmov 0.0   ;;  %vm589_vm14 = vcmask 64512  }
  0x29   :  { %1122 = vrcp.f32 %v203_v15  ;;  %276 = vmatpush.bf16.msra.mxu0 %v1042_v24  ;;  %v1051_v27 = vld [vmem:[#allocation8] sm:$0xff]  ;;  %v1040_v29 = vld [vmem:[#allocation4 + $0x28] sm:$0xff]  ;;  %v1038_v32 = vld [vmem:[#allocation4 + $0x18] sm:$0xff]  ;;  %s1338_s28 = smov [#allocation17]   ;;  %s825_s14 = sshll.u32 %s1519_s13, 4  ;;  %s826_s14 = int_to_ptr.hbm [resolvable:$true] %s825_s14 }
  0x2a   :  { %v1039_v30 = vld [vmem:[#allocation4 + $0x20] sm:$0xff]  ;;  %v1037_v33 = vld [vmem:[#allocation4 + $0x10] sm:$0xff]  ;;  %v1036_v35 = vld [vmem:[#allocation4 + $0x8] sm:$0xff]  ;;  %s823_s29 = sshll.u32 %s1338_s28, 4  ;;  %s824_s29 = int_to_ptr.vmem [resolvable:$true] %s823_s29 }
  0x2b   :  { %v1035_v38 = vld [vmem:[#allocation4] sm:$0xff]  ;;  %v1066_v44 = vld [vmem:[#allocation11 + $0x38] sm:$0xff]  ;;  %v1065_v49 = vld [vmem:[#allocation11 + $0x30] sm:$0xff] }
  0x2c   :  { %469 = vmatpush.bf16.msra.mxu2 %v1057_v19  ;;  %v1050_v47 = vld [vmem:[#allocation10 + $0x38] sm:$0xff]  ;;  %550 = vmatpush.bf16.msra.mxu3 %v1066_v44  ;;  %v1049_v51 = vld [vmem:[#allocation10 + $0x30] sm:$0xff]  ;;  %v1064_v54 = vld [vmem:[#allocation11 + $0x28] sm:$0xff] }
  0x2d   :  { %277 = vmatpush.bf16.msra.mxu0 %v1041_v26  ;;  %358 = vmatpush.bf16.msra.mxu1 %v1050_v47  ;;  %v1063_v56 = vld [vmem:[#allocation11 + $0x20] sm:$0xff]  ;;  %v1062_v62 = vld [vmem:[#allocation11 + $0x18] sm:$0xff]  ;;  %v1060_v15 = vld [vmem:[#allocation11 + $0x8] sm:$0xff] }
  0x2e   :  { %v1044_v24 = vld [vmem:[#allocation10 + $0x8] sm:$0xff] }
  0x2f   :  { %376 = vrot.lane.b32.xlu0 %v1451_v0, %s1329_s16  ;;  %1106 = vset.pattern.permute.xlu1 %v1331_v4  ;;  %v1123_v17 = vpop.eup %1122 }
  0x30   :  { %1109 = vset.pattern.permute.xlu0 %v1332_v5  ;;  %470 = vmatpush.bf16.msra.mxu2 %v1056_v20 }
  0x31   :  { %278 = vmatpush.bf16.msra.mxu0 %v1040_v29  ;;  %551 = vmatpush.bf16.msra.mxu3 %v1065_v49 }
  0x32   :  { %359 = vmatpush.bf16.msra.mxu1 %v1049_v51 }
  0x34   :  { %471 = vmatpush.bf16.msra.mxu2 %v1055_v21  ;;  %v1059_v21 = vld [vmem:[#allocation11] sm:$0xff] }
  0x35   :  { %279 = vmatpush.bf16.msra.mxu0 %v1039_v30  ;;  %552 = vmatpush.bf16.msra.mxu3 %v1064_v54  ;;  %v1067_v54 = vld [vmem:[#allocation14] sm:$0xff] }
  0x38   :  { %472 = vmatpush.bf16.msra.mxu2 %v1054_v22  ;;  %v1046_v22 = vld [vmem:[#allocation10 + $0x18] sm:$0xff] }
  0x39   :  { %280 = vmatpush.bf16.msra.mxu0 %v1038_v32  ;;  %553 = vmatpush.bf16.msra.mxu3 %v1063_v56  ;;  %v1074_v32 = vld [vmem:[#allocation14 + $0x38] sm:$0xff]  ;;  %v1081_v56 = vld [vmem:[#allocation15 + $0x30] sm:$0xff] }
  0x3c   :  { %473 = vmatpush.bf16.msra.mxu2 %v1053_v23  ;;  %v1045_v23 = vld [vmem:[#allocation10 + $0x10] sm:$0xff] }
  0x3d   :  { %281 = vmatpush.bf16.msra.mxu0 %v1037_v33  ;;  %554 = vmatpush.bf16.msra.mxu3 %v1062_v62  ;;  %v1073_v33 = vld [vmem:[#allocation14 + $0x30] sm:$0xff] }
  0x3e   :  { %v1077_v62 = vld [vmem:[#allocation15 + $0x10] sm:$0xff] }
  0x40   :  { %474 = vmatpush.bf16.msra.mxu2 %v1052_v25  ;;  %v1043_v25 = vld [vmem:[#allocation10] sm:$0xff] }
  0x41   :  { %282 = vmatpush.bf16.msra.mxu0 %v1036_v35  ;;  %v1072_v35 = vld [vmem:[#allocation14 + $0x28] sm:$0xff] }
  0x44   :  { %475 = vmatpush.bf16.msra.mxu2 %v1051_v27 }
  0x45   :  { %283 = vmatpush.bf16.msra.mxu0 %v1035_v38  ;;  %v1071_v38 = vld [vmem:[#allocation14 + $0x20] sm:$0xff] }
  0x48   :  { %721 = vmatpush.bf16.msrb.mxu2 %v1074_v32 }
  0x4c   :  { %722 = vmatpush.bf16.msrb.mxu2 %v1073_v33 }
  0x50   :  { %723 = vmatpush.bf16.msrb.mxu2 %v1072_v35 }
  0x54   :  { %724 = vmatpush.bf16.msrb.mxu2 %v1071_v38 }
  0x99   :  { %v374_v7 = vpop.permute.xlu0 %373  ;;  %v164_v11 = vpop.permute.xlu1 %163 }
  0x9a   :  { %vm375_vm0 = vcmp.lt.s32.totalorder %v1457_v8, %v374_v7  ;;  %vm165_vm1 = vcmp.lt.s32.totalorder %v1457_v8, %v164_v11 }
  0x9b   :  { %v166_v12 = vsel %vm165_vm1, %v1451_v0, 128 }
  0xa1   :  { %v377_v9 = vpop.permute.xlu0 %376 }
  0xa2   :  { %v378_v10 = vsel %vm375_vm0, %v377_v9, 128 }
  0xa3   :  { %397 = vperm.xlu0 %1109, %v378_v10   ;;  %385 = vperm.xlu2 %1107, %v378_v10  }
  0xa4   :  { %380 = vperm.xlu1 %1106, %v378_v10  }
  0xab   :  { %1113 = vset.pattern.permute.xlu0 %v1333_v13  ;;  %1108 = vset.pattern.permute.xlu2 %v1334_v14 }
  0xac   :  { %168 = vperm.xlu1 %1106, %v166_v12   ;;  %191 = vperm.xlu0 %1113, %v166_v12  }
  0xad   :  { %391 = vperm.xlu2 %1108, %v378_v10  }
  0xb4   :  { %1111 = vset.pattern.permute.xlu1 %v1334_v14  ;;  %1117 = vset.pattern.permute.xlu0 %v1331_v4 }
  0xb5   :  { %1110 = vset.pattern.permute.xlu2 %v1330_v3  ;;  %179 = vperm.xlu1 %1111, %v166_v12   ;;  %v1061_v3 = vld [vmem:[#allocation11 + $0x10] sm:$0xff] }
  0xb6   :  { %173 = vperm.xlu2 %1110, %v166_v12   ;;  %555 = vmatpush.bf16.msra.mxu3 %v1061_v3 }
  0xba   :  { %556 = vmatpush.bf16.msra.mxu3 %v1060_v15 }
  0xbd   :  { %1114 = vset.pattern.permute.xlu1 %v1335_v16  ;;  %v1048_v16 = vld [vmem:[#allocation10 + $0x28] sm:$0xff] }
  0xbe   :  { %1112 = vset.pattern.permute.xlu2 %v1332_v5  ;;  %197 = vperm.xlu1 %1114, %v166_v12  }
  0xbf   :  { %185 = vperm.xlu2 %1112, %v166_v12   ;;  %360 = vmatpush.bf16.msra.mxu1 %v1048_v16 }
  0xc0   :  { %557 = vmatpush.bf16.msra.mxu3 %v1059_v21 }
  0xc6   :  { %1116 = vset.pattern.permute.xlu1 %v1336_v28 }
  0xc7   :  { %1115 = vset.pattern.permute.xlu2 %v1328_v2  ;;  %565 = vperm.xlu1 %1116, %v1451_v0  }
  0xc8   :  { %207 = vperm.xlu2 %1115, %v1123_v17  }
  0xfd   :  { %v386_v31 = vpop.permute.xlu2 %385 }
  0xfe   :  { %vm387_vm2 = vcmp.eq.s32.totalorder %v1457_v8, %v386_v31  ;;  %v635_v31 = vld [vmem:[%s1513_s7] sm:$0xff] }
  0xff   :  { %v388_v39 = vsel %vm387_vm2, 1, %v1331_v4  ;;  %639 = vperm.xlu0 %1117, %v635_v31  }
 0x107   :  { %v392_v34 = vpop.permute.xlu2 %391 }
 0x108   :  { %vm393_vm3 = vcmp.eq.s32.totalorder %v1457_v8, %v392_v34  ;;  %v1118_v34 = vld [vmem:[%s1512_s6] ss:$0 sm:$0xff]  ;;  %s645_s6 = sld [smem:[#allocation13]] }
 0x109   :  { %v394_v42 = vsel %vm393_vm3, 1, %v1331_v4 }
 0x10e   :  { %v647_v3 = vstv %s645_s6 }
 0x110   :  { %v174_v45 = vpop.permute.xlu2 %173 }
 0x111   :  { %vm175_vm7 = vcmp.eq.s32.totalorder %v1457_v8, %v174_v45  ;;  %v1119_v45 = vld [vmem:[%s1510_s4] ss:$0 sm:$0xff]  ;;  %s970_s4 = sld [smem:[#allocation13 + $0x1]] }
 0x112   :  { %v176_v58 = vsel %vm175_vm7, 1, %v1331_v4 }
 0x115   :  { %v398_v36 = vpop.permute.xlu0 %397 }
 0x116   :  { %v381_v37 = vpop.permute.xlu1 %380  ;;  %vm399_vm5 = vcmp.eq.s32.totalorder %v1457_v8, %v398_v36 }
 0x117   :  { %vm382_vm4 = vcmp.eq.s32.totalorder %v1457_v8, %v381_v37  ;;  %v400_v46 = vsel %vm399_vm5, 1, %v1331_v4 }
 0x118   :  { %v383_v40 = vsel %vm382_vm4, 1, %v1331_v4 }
 0x119   :  { %v389_v41 = vadd.s32 %v388_v39, %v383_v40  ;;  %v186_v57 = vpop.permute.xlu2 %185 }
 0x11a   :  { %vm187_vm9 = vcmp.eq.s32.totalorder %v1457_v8, %v186_v57  ;;  %v1080_v57 = vld [vmem:[#allocation15 + $0x28] sm:$0xff] }
 0x11b   :  { %v395_v43 = vadd.s32 %v394_v42, %v389_v41  ;;  %v188_v1 = vsel %vm187_vm9, 1, %v1331_v4  ;;  %v1070_v41 = vld [vmem:[#allocation14 + $0x18] sm:$0xff] }
 0x11c   :  { %725 = vmatpush.bf16.msrb.mxu2 %v1070_v41 }
 0x11d   :  { %v401_v48 = vadd.s32 %v400_v46, %v395_v43  ;;  %v1069_v46 = vld [vmem:[#allocation14 + $0x10] sm:$0xff] }
 0x11e   :  { %v169_v50 = vpop.permute.xlu1 %168  ;;  %v192_v63 = vpop.permute.xlu0 %191 }
 0x11f   :  { %v402_v52 = vcvt.s32.f32 %v401_v48  ;;  %vm170_vm6 = vcmp.eq.s32.totalorder %v1457_v8, %v169_v50  ;;  %vm193_vm10 = vcmp.eq.s32.totalorder %v1457_v8, %v192_v63 }
 0x120   :  { %v171_v55 = vsel %vm170_vm6, 1, %v1331_v4  ;;  %v194_v5 = vsel %vm193_vm10, 1, %v1331_v4  ;;  %726 = vmatpush.bf16.msrb.mxu2 %v1069_v46 }
 0x121   :  { %v403_v53 = vpack.c.bf16 %v402_v52, %v402_v52  ;;  %v177_v60 = vadd.s32 %v176_v58, %v171_v55  ;;  %v1082_v55 = vld [vmem:[#allocation15 + $0x38] sm:$0xff]  ;;  %v1079_v58 = vld [vmem:[#allocation15 + $0x20] sm:$0xff] }
 0x122   :  { %v208_v11 = vpop.permute.xlu2 %207  ;;  %804 = vmatpush.bf16.msrb.mxu3 %v1082_v55 }
 0x123   :  { %476 = vmatmul.bf16.vlgmr.msra.gmra.mxu2 %v403_v53  ;;  %v1068_v53 = vld [vmem:[#allocation14 + $0x8] sm:$0xff] }
 0x124   :  { %727 = vmatpush.bf16.msrb.mxu2 %v1068_v53 }
 0x126   :  { %805 = vmatpush.bf16.msrb.mxu3 %v1081_v56 }
 0x127   :  { %v180_v59 = vpop.permute.xlu1 %179 }
 0x128   :  { %vm181_vm8 = vcmp.eq.s32.totalorder %v1457_v8, %v180_v59  ;;  %728 = vmatpush.bf16.msrb.mxu2 %v1067_v54 }
 0x129   :  { %v182_v61 = vsel %vm181_vm8, 1, %v1331_v4 }
 0x12a   :  { %v183_v0 = vadd.s32 %v182_v61, %v177_v60  ;;  %806 = vmatpush.bf16.msrb.mxu3 %v1080_v57  ;;  %v1078_v60 = vld [vmem:[#allocation15 + $0x18] sm:$0xff] }
 0x12c   :  { %v189_v2 = vadd.s32 %v188_v1, %v183_v0  ;;  %v649_v1 = vstv %s970_s4 }
 0x12e   :  { %v195_v7 = vadd.s32 %v194_v5, %v189_v2  ;;  %807 = vmatpush.bf16.msrb.mxu3 %v1079_v58 }
 0x130   :  { %v198_v6 = vpop.permute.xlu1 %197 }
 0x131   :  { %vm199_vm11 = vcmp.eq.s32.totalorder %v1457_v8, %v198_v6 }
 0x132   :  { %v200_v9 = vsel %vm199_vm11, 1, %v1331_v4  ;;  %v1047_v4 = vld [vmem:[#allocation10 + $0x20] sm:$0xff]  ;;  %808 = vmatpush.bf16.msrb.mxu3 %v1078_v60 }
 0x133   :  { %v201_v10 = vadd.s32 %v200_v9, %v195_v7  ;;  %361 = vmatpush.bf16.msra.mxu1 %v1047_v4 }
 0x135   :  { %v202_v12 = vcvt.s32.f32 %v201_v10 }
 0x136   :  { %809 = vmatpush.bf16.msrb.mxu3 %v1077_v62 }
 0x137   :  { %v210_v13 = vmul.f32 %v208_v11, %v202_v12  ;;  %362 = vmatpush.bf16.msra.mxu1 %v1046_v22  ;;  %v1076_v12 = vld [vmem:[#allocation15 + $0x8] sm:$0xff] }
 0x139   :  { %v211_v14 = vpack.c.bf16 %v210_v13, %v210_v13  ;;  %v566_v17 = vpop.permute.xlu1 %565  ;;  %v1075_v13 = vld [vmem:[#allocation15] sm:$0xff] }
 0x13a   :  { %vm567_vm12 = vcmp.eq.s32.totalorder %v566_v17, %v1457_v8  ;;  %810 = vmatpush.bf16.msrb.mxu3 %v1076_v12 }
 0x13b   :  { %284 = vmatmul.bf16.vlgmr.msra.gmra.mxu0 %v211_v14  ;;  %v967_v19 = vsel %vm567_vm12, 1.0, %v1337_v18  ;;  %363 = vmatpush.bf16.msra.mxu1 %v1045_v23  ;;  %v1120_v14 = vld [vmem:[%s1516_s10] ss:$0 sm:$0xff] }
 0x13c   :  { %v570_v20 = vpack.c.bf16 %v967_v19, %v967_v19 }
 0x13e   :  { %573 = vxpose.xlu2.c.b16.start.end [1/1] (short) (narrow) %v570_v20, 16  ;;  %811 = vmatpush.bf16.msrb.mxu3 %v1075_v13  ;;  %v1121_v20 = vld [vmem:[%s1518_s12] ss:$0 sm:$0xff] }
 0x13f   :  { %364 = vmatpush.bf16.msra.mxu1 %v1044_v24 }
 0x143   :  { %365 = vmatpush.bf16.msra.mxu1 %v1043_v25 }
 0x171   :  { %v640_v61 = vpop.permute.xlu0 %639 }
 0x1a6   :  { %v477_v26 = vpop.f32.mrf.mxu2 }
 0x1a7   :  { %v481_v27 = vpack.c.bf16 %v477_v26, %v477_v26 }
 0x1a9   :  { %558 = vmatmul.bf16.vlgmr.msra.gmra.mxu3 %v481_v27 }
 0x1ae   :  { %v479_v8 = vpop.f32.mrf.mxu2 }
 0x1b8   :  { %v285_v28 = vpop.f32.mrf.mxu0 }
 0x1b9   :  { %v289_v29 = vpack.c.bf16 %v285_v28, %v285_v28 }
 0x1bb   :  { %366 = vmatmul.bf16.vlgmr.msra.gmra.mxu1 %v289_v29 }
 0x1c0   :  { %v287_v30 = vpop.f32.mrf.mxu0 }
 0x1df   :  { %v581_v44 = vpop.trf.xlu2 }
 0x22c   :  { %v559_v36 = vpop.f32.mrf.mxu3 }
 0x22d   :  { %v560_v37 = vadd.f32 %v1118_v34, %v559_v36 }
 0x22f   :  { %v563_v39 = vmax.f32 %v560_v37, 0.0 }
 0x231   :  { %v613_v40 = vpack.c.bf16 %v563_v39, %v563_v39 }
 0x233   :  { %v615_v42 = vsel %vm593_vm13, %v613_v40, 0 }
 0x234   :  { %v561_v43 = vpop.f32.mrf.mxu3  ;;  %624 = vmatpush.bf16.msrb.mxu1 %v615_v42 }
 0x237   :  { %969 = vmatmul.msk.bf16.vlgmr.msrb.gmra.mxu1 %vm589_vm14, %v581_v44 }
 0x238   :  { %v367_v47 = vpop.f32.mrf.mxu1 }
 0x239   :  { %v368_v48 = vadd.f32 %v1119_v45, %v367_v47 }
 0x23b   :  { %v371_v49 = vmax.f32 %v368_v48, 0.0 }
 0x23d   :  { %v572_v50 = vpack.c.bf16 %v371_v49, %v371_v49 }
 0x23f   :  { %v595_v51 = vsel %vm593_vm13, %v572_v50, 0 }
 0x240   :  { %v369_v52 = vpop.f32.mrf.mxu1  ;;  %604 = vmatpush.bf16.msrb.mxu0 %v595_v51 }
 0x243   :  { %968 = vmatmul.msk.bf16.vlgmr.msrb.gmra.mxu0 %vm589_vm14, %v581_v44 }
 0x2b4   :  { %v626_v59 = vpop.f32.mrf.mxu1 }
 0x2b5   :  { %v644_v0 = vmul.f32 %v640_v61, %v626_v59 }
 0x2b7   :  { %v650_v6 = vmul.f32 %v649_v1, %v644_v0 }
 0x2bc   :  { %v628_v63 = vpop.f32.mrf.mxu1 }
 0x2c0   :  { %v606_v2 = vpop.f32.mrf.mxu0 }
 0x2c1   :  { %v642_v5 = vmul.f32 %v640_v61, %v606_v2 }
 0x2c3   :  { %v648_v7 = vmul.f32 %v647_v3, %v642_v5 }
 0x2c5   :  { %v651_v9 = vadd.f32 %v650_v6, %v648_v7 }
 0x2c7   :  { %v652_v10 = vpack.c.bf16 %v651_v9, %v651_v9 }
 0x2c8   :  { %v608_v11 = vpop.f32.mrf.mxu0 }
 0x2c9   :  { %729 = vmatmul.bf16.vlgmr.msrb.gmra.mxu2 %v652_v10 }
 0x34c   :  { %v730_v15 = vpop.f32.mrf.mxu2 }
 0x34d   :  { %v731_v16 = vadd.f32 %v1120_v14, %v730_v15 }
 0x34f   :  { %v734_v17 = vmax.f32 %v731_v16, 0.0 }
 0x351   :  { %v735_v18 = vpack.c.bf16 %v734_v17, %v734_v17 }
 0x353   :  { %812 = vmatmul.bf16.vlgmr.msrb.gmra.mxu3 %v735_v18 }
 0x354   :  { %v732_v19 = vpop.f32.mrf.mxu2 }
 0x3d6   :  { %v813_v21 = vpop.f32.mrf.mxu3 }
 0x3d7   :  { %v814_v4 = vadd.f32 %v1121_v20, %v813_v21 }
 0x3d9   :  { %817 = vst [vmem:[#allocation17] sm:$0xff] %v814_v4 }
 0x3da   :  { %828 = dma.vmem_to_hbm [thread:$0]  %s824_s29, 128, %s826_s14, [#allocation6]  }
 0x3de   :  { %v815_v22 = vpop.f32.mrf.mxu3 }
 0x3df   :  { %1316 = dma.done.wait [#allocation6], 128  }
 0x3e0   :  { %1317 = vsyncadd [#allocation6], 4294967168 }
 0x3e1   :  { %833 = vsyncpa [#allocation5], 1 }
 0x3e2   :  { %834 = vsyncpa [#allocation9], 1 }
 0x3e3   :  { %835 = vsyncpa [#allocation12], 1 }
 0x3e4   :  { %836 = vsyncpa [#allocation16], 1 }
 0x3e5   :  { %837 = vsyncpa [#allocation6], 1 }
 0x3e6   :  { %838 = vsyncpa [#allocation7], 1 }

// kernel: tpu_custom_call.1
= control target key start
LH: loop header
LB: loop body
LE: loop exit
PB: predicated region body
PF: predicated region fallthrough
CT: control target
= control target key end

     0   :  { %18 = vsyncpa [#allocation5], 0  ;;  %s1506_s0 = inlined_call_operand.vmem [shape: s32[8,128], index: 0, kind: input, shape index: {}]   ;;  %s1507_s1 = inlined_call_operand.hbm [shape: bf16[128,128], index: 1, kind: input, shape index: {}]   ;;  %s1508_s2 = inlined_call_operand.hbm [shape: bf16[128,128], index: 2, kind: input, shape index: {}]   ;;  %s1509_s3 = inlined_call_operand.hbm [shape: bf16[128,128], index: 3, kind: input, shape index: {}]   ;;  %s1510_s4 = inlined_call_operand.vmem [shape: f32[1,128], index: 4, kind: input, shape index: {}]   ;;  %s1511_s5 = inlined_call_operand.hbm [shape: bf16[128,128], index: 5, kind: input, shape index: {}]   ;;  %s1512_s6 = inlined_call_operand.vmem [shape: f32[1,128], index: 6, kind: input, shape index: {}]   ;;  %s1513_s7 = inlined_call_operand.vmem [shape: f32[8,1], index: 7, kind: input, shape index: {}]   ;;  %s1514_s8 = inlined_call_operand.vmem [shape: f32[1,2], index: 8, kind: input, shape index: {}]   ;;  %s1515_s9 = inlined_call_operand.hbm [shape: bf16[128,128], index: 9, kind: input, shape index: {}]   ;;  %s1516_s10 = inlined_call_operand.vmem [shape: f32[1,128], index: 10, kind: input, shape index: {}]   ;;  %s1517_s11 = inlined_call_operand.hbm [shape: bf16[128,128], index: 11, kind: input, shape index: {}]   ;;  %s1518_s12 = inlined_call_operand.vmem [shape: f32[1,128], index: 12, kind: input, shape index: {}]   ;;  %s1519_s13 = inlined_call_operand.hbm [shape: f32[8,128], index: 13, kind: output, shape index: {}]  }
   0x1   :  { %19 = vsyncpa [#allocation9], 0 }
   0x2   :  { %20 = vsyncpa [#allocation12], 0 }
   0x3   :  { %21 = vsyncpa [#allocation7], 0 }
   0x4   :  { %22 = vsyncpa [#allocation16], 0 }
   0x5   :  { %23 = vsyncpa [#allocation6], 0  ;;  %s43_s27 = sshll.u32 %s1508_s2, 4  ;;  %s1318_s28 = smov [#allocation8]   ;;  %s44_s27 = int_to_ptr.hbm [resolvable:$true] %s43_s27 }
   0x6   :  { %s45_s29 = sshll.u32 %s1318_s28, 4  ;;  %s71_s15 = sshll.u32 %s1511_s5, 4  ;;  %s46_s29 = int_to_ptr.vmem [resolvable:$true] %s45_s29  ;;  %s72_s15 = int_to_ptr.hbm [resolvable:$true] %s71_s15 }
   0x7   :  { %s1319_s16 = smov 64   ;;  %s1320_s17 = smov 4  }
   0x8   :  { %51 = dma.hbm_to_vmem [thread:$0]  %s44_s27, 1024, %s46_s29, [#allocation9], %s1319_s16, %s1319_s16, %s1320_s17  }
   0x9   :  { %s1321_s18 = smov [#allocation11]   ;;  %s30_s2 = sshll.u32 %s1507_s1, 4  ;;  %s31_s2 = int_to_ptr.hbm [resolvable:$true] %s30_s2 }
   0xa   :  { %s73_s19 = sshll.u32 %s1321_s18, 4  ;;  %s56_s23 = sshll.u32 %s1509_s3, 4  ;;  %s74_s19 = int_to_ptr.vmem [resolvable:$true] %s73_s19  ;;  %s57_s23 = int_to_ptr.hbm [resolvable:$true] %s56_s23 }
   0xb   :  { %79 = dma.hbm_to_vmem [thread:$0]  %s72_s15, 1024, %s74_s19, [#allocation12], %s1319_s16, %s1319_s16, %s1320_s17  }
   0xc   :  { %s1322_s24 = smov [#allocation4]   ;;  %s1323_s26 = smov [#allocation10]  }
   0xd   :  { %s32_s25 = sshll.u32 %s1322_s24, 4  ;;  %s58_s1 = sshll.u32 %s1323_s26, 4  ;;  %s33_s25 = int_to_ptr.vmem [resolvable:$true] %s32_s25  ;;  %s59_s1 = int_to_ptr.vmem [resolvable:$true] %s58_s1 }
   0xe   :  { %38 = dma.hbm_to_vmem [thread:$0]  %s31_s2, 1024, %s33_s25, [#allocation5], %s1319_s16, %s1319_s16, %s1320_s17  }
   0xf   :  { %s89_s29 = sshll.u32 %s1514_s8, 4  ;;  %s97_s14 = sshll.u32 %s1515_s9, 4  ;;  %s90_s29 = int_to_ptr.vmem [resolvable:$true] %s89_s29  ;;  %s98_s14 = int_to_ptr.hbm [resolvable:$true] %s97_s14 }
  0x10   :  { %64 = dma.hbm_to_vmem [thread:$0]  %s57_s23, 1024, %s59_s1, [#allocation9], %s1319_s16, %s1319_s16, %s1320_s17  }
  0x11   :  { %s1324_s15 = smov [#allocation13]   ;;  %s1325_s18 = smov [#allocation14]  }
  0x12   :  { %92 = dma.vmem_to_smem %s90_s29, 16, %s1324_s15, [#allocation7]  }
  0x13   :  { %s99_s19 = sshll.u32 %s1325_s18, 4  ;;  %s112_s2 = sshll.u32 %s1517_s11, 4  ;;  %s100_s19 = int_to_ptr.vmem [resolvable:$true] %s99_s19  ;;  %s113_s2 = int_to_ptr.hbm [resolvable:$true] %s112_s2 }
  0x14   :  { %105 = dma.hbm_to_vmem [thread:$0]  %s98_s14, 1024, %s100_s19, [#allocation12], %s1319_s16, %s1319_s16, %s1320_s17  }
  0x15   :  { %s1326_s8 = smov [#allocation15]  }
  0x16   :  { %s114_s5 = sshll.u32 %s1326_s8, 4  ;;  %s115_s5 = int_to_ptr.vmem [resolvable:$true] %s114_s5 }
  0x17   :  { %120 = dma.hbm_to_vmem [thread:$0]  %s113_s2, 1024, %s115_s5, [#allocation16], %s1319_s16, %s1319_s16, %s1320_s17  }
  0x18   :  { %1304 = dma.done.wait [#allocation5], 1024  }
  0x19   :  { %1305 = vsyncadd [#allocation5], 4294966272 }
  0x1a   :  { %1306 = dma.done.wait [#allocation9], 2048  }
  0x1b   :  { %1307 = vsyncadd [#allocation9], 4294965248 }
  0x1c   :  { %1308 = dma.done.wait [#allocation12], 1024  }
  0x1d   :  { %1309 = vsyncadd [#allocation12], 4294966272 }
  0x1e   :  { %1310 = dma.done.wait [#allocation7], 16  }
  0x1f   :  { %1311 = vsyncadd [#allocation7], 4294967280 }
  0x20   :  { %1312 = dma.done.wait [#allocation12], 1024  }
  0x21   :  { %1313 = vsyncadd [#allocation12], 4294966272 }
  0x22   :  { %1314 = dma.done.wait [#allocation16], 1024  }
  0x23   :  { %1315 = vsyncadd [#allocation16], 4294966272 }
  0x24   :  { %151 = sfence }
  0x25   :  { %v1451_v0 = vld [vmem:[%s1506_s0] sm:$0xff]  ;;  %v1327_v1 = vmov 11   ;;  %v1328_v2 = vmov 10   ;;  %s1329_s16 = smov 122   ;;  %v1330_v3 = vmov 1   ;;  %v1331_v4 = vmov 0  }
  0x26   :  { %1104 = vset.pattern.permute.xlu0 %v1327_v1  ;;  %1105 = vset.pattern.permute.xlu1 %v1328_v2  ;;  %v1332_v5 = vmov 3   ;;  %v160_v6 = vlaneseq  ;;  %v1333_v13 = vmov 4   ;;  %v1334_v14 = vmov 2   ;;  %v1058_v18 = vld [vmem:[#allocation8 + $0x38] sm:$0xff]  ;;  %v1057_v19 = vld [vmem:[#allocation8 + $0x30] sm:$0xff]  ;;  %v1056_v20 = vld [vmem:[#allocation8 + $0x28] sm:$0xff] }
  0x27   :  { %373 = vperm.xlu0 %1104, %v1451_v0   ;;  %163 = vperm.xlu1 %1105, %v1451_v0   ;;  %v203_v15 = vcvt.s32.f32 %v1451_v0  ;;  %v1335_v16 = vmov 5   ;;  %v1055_v21 = vld [vmem:[#allocation8 + $0x20] sm:$0xff]  ;;  %v1054_v22 = vld [vmem:[#allocation8 + $0x18] sm:$0xff]  ;;  %v1053_v23 = vld [vmem:[#allocation8 + $0x10] sm:$0xff]  ;;  %v1336_v28 = vmov 12   ;;  %vm593_vm13 = vcmask 1043456  }
  0x28   :  { %1107 = vset.pattern.permute.xlu2 %v1330_v3  ;;  %v1457_v8 = vand.u32 127, %v160_v6  ;;  %468 = vmatpush.bf16.msra.mxu2 %v1058_v18  ;;  %v1042_v24 = vld [vmem:[#allocation4 + $0x38] sm:$0xff]  ;;  %v1052_v25 = vld [vmem:[#allocation8 + $0x8] sm:$0xff]  ;;  %v1041_v26 = vld [vmem:[#allocation4 + $0x30] sm:$0xff]  ;;  %v1337_v18 = vmov 0.0   ;;  %vm589_vm14 = vcmask 64512  }
  0x29   :  { %1122 = vrcp.f32 %v203_v15  ;;  %276 = vmatpush.bf16.msra.mxu0 %v1042_v24  ;;  %v1051_v27 = vld [vmem:[#allocation8] sm:$0xff]  ;;  %v1040_v29 = vld [vmem:[#allocation4 + $0x28] sm:$0xff]  ;;  %v1038_v32 = vld [vmem:[#allocation4 + $0x18] sm:$0xff]  ;;  %s1338_s28 = smov [#allocation17]   ;;  %s825_s14 = sshll.u32 %s1519_s13, 4  ;;  %s826_s14 = int_to_ptr.hbm [resolvable:$true] %s825_s14 }
  0x2a   :  { %v1039_v30 = vld [vmem:[#allocation4 + $0x20] sm:$0xff]  ;;  %v1037_v33 = vld [vmem:[#allocation4 + $0x10] sm:$0xff]  ;;  %v1036_v35 = vld [vmem:[#allocation4 + $0x8] sm:$0xff]  ;;  %s823_s29 = sshll.u32 %s1338_s28, 4  ;;  %s824_s29 = int_to_ptr.vmem [resolvable:$true] %s823_s29 }
  0x2b   :  { %v1035_v38 = vld [vmem:[#allocation4] sm:$0xff]  ;;  %v1066_v44 = vld [vmem:[#allocation11 + $0x38] sm:$0xff]  ;;  %v1065_v49 = vld [vmem:[#allocation11 + $0x30] sm:$0xff] }
  0x2c   :  { %469 = vmatpush.bf16.msra.mxu2 %v1057_v19  ;;  %v1050_v47 = vld [vmem:[#allocation10 + $0x38] sm:$0xff]  ;;  %550 = vmatpush.bf16.msra.mxu3 %v1066_v44  ;;  %v1049_v51 = vld [vmem:[#allocation10 + $0x30] sm:$0xff]  ;;  %v1064_v54 = vld [vmem:[#allocation11 + $0x28] sm:$0xff] }
  0x2d   :  { %277 = vmatpush.bf16.msra.mxu0 %v1041_v26  ;;  %358 = vmatpush.bf16.msra.mxu1 %v1050_v47  ;;  %v1063_v56 = vld [vmem:[#allocation11 + $0x20] sm:$0xff]  ;;  %v1062_v62 = vld [vmem:[#allocation11 + $0x18] sm:$0xff]  ;;  %v1060_v15 = vld [vmem:[#allocation11 + $0x8] sm:$0xff] }
  0x2e   :  { %v1044_v24 = vld [vmem:[#allocation10 + $0x8] sm:$0xff] }
  0x2f   :  { %376 = vrot.lane.b32.xlu0 %v1451_v0, %s1329_s16  ;;  %1106 = vset.pattern.permute.xlu1 %v1331_v4  ;;  %v1123_v17 = vpop.eup %1122 }
  0x30   :  { %1109 = vset.pattern.permute.xlu0 %v1332_v5  ;;  %470 = vmatpush.bf16.msra.mxu2 %v1056_v20 }
  0x31   :  { %278 = vmatpush.bf16.msra.mxu0 %v1040_v29  ;;  %551 = vmatpush.bf16.msra.mxu3 %v1065_v49 }
  0x32   :  { %359 = vmatpush.bf16.msra.mxu1 %v1049_v51 }
  0x34   :  { %471 = vmatpush.bf16.msra.mxu2 %v1055_v21  ;;  %v1059_v21 = vld [vmem:[#allocation11] sm:$0xff] }
  0x35   :  { %279 = vmatpush.bf16.msra.mxu0 %v1039_v30  ;;  %552 = vmatpush.bf16.msra.mxu3 %v1064_v54  ;;  %v1067_v54 = vld [vmem:[#allocation14] sm:$0xff] }
  0x38   :  { %472 = vmatpush.bf16.msra.mxu2 %v1054_v22  ;;  %v1046_v22 = vld [vmem:[#allocation10 + $0x18] sm:$0xff] }
  0x39   :  { %280 = vmatpush.bf16.msra.mxu0 %v1038_v32  ;;  %553 = vmatpush.bf16.msra.mxu3 %v1063_v56  ;;  %v1074_v32 = vld [vmem:[#allocation14 + $0x38] sm:$0xff]  ;;  %v1081_v56 = vld [vmem:[#allocation15 + $0x30] sm:$0xff] }
  0x3c   :  { %473 = vmatpush.bf16.msra.mxu2 %v1053_v23  ;;  %v1045_v23 = vld [vmem:[#allocation10 + $0x10] sm:$0xff] }
  0x3d   :  { %281 = vmatpush.bf16.msra.mxu0 %v1037_v33  ;;  %554 = vmatpush.bf16.msra.mxu3 %v1062_v62  ;;  %v1073_v33 = vld [vmem:[#allocation14 + $0x30] sm:$0xff] }
  0x3e   :  { %v1077_v62 = vld [vmem:[#allocation15 + $0x10] sm:$0xff] }
  0x40   :  { %474 = vmatpush.bf16.msra.mxu2 %v1052_v25  ;;  %v1043_v25 = vld [vmem:[#allocation10] sm:$0xff] }
  0x41   :  { %282 = vmatpush.bf16.msra.mxu0 %v1036_v35  ;;  %v1072_v35 = vld [vmem:[#allocation14 + $0x28] sm:$0xff] }
  0x44   :  { %475 = vmatpush.bf16.msra.mxu2 %v1051_v27 }
  0x45   :  { %283 = vmatpush.bf16.msra.mxu0 %v1035_v38  ;;  %v1071_v38 = vld [vmem:[#allocation14 + $0x20] sm:$0xff] }
  0x48   :  { %721 = vmatpush.bf16.msrb.mxu2 %v1074_v32 }
  0x4c   :  { %722 = vmatpush.bf16.msrb.mxu2 %v1073_v33 }
  0x50   :  { %723 = vmatpush.bf16.msrb.mxu2 %v1072_v35 }
  0x54   :  { %724 = vmatpush.bf16.msrb.mxu2 %v1071_v38 }
  0x99   :  { %v374_v7 = vpop.permute.xlu0 %373  ;;  %v164_v11 = vpop.permute.xlu1 %163 }
  0x9a   :  { %vm375_vm0 = vcmp.lt.s32.totalorder %v1457_v8, %v374_v7  ;;  %vm165_vm1 = vcmp.lt.s32.totalorder %v1457_v8, %v164_v11 }
  0x9b   :  { %v166_v12 = vsel %vm165_vm1, %v1451_v0, 128 }
  0xa1   :  { %v377_v9 = vpop.permute.xlu0 %376 }
  0xa2   :  { %v378_v10 = vsel %vm375_vm0, %v377_v9, 128 }
  0xa3   :  { %397 = vperm.xlu0 %1109, %v378_v10   ;;  %385 = vperm.xlu2 %1107, %v378_v10  }
  0xa4   :  { %380 = vperm.xlu1 %1106, %v378_v10  }
  0xab   :  { %1113 = vset.pattern.permute.xlu0 %v1333_v13  ;;  %1108 = vset.pattern.permute.xlu2 %v1334_v14 }
  0xac   :  { %168 = vperm.xlu1 %1106, %v166_v12   ;;  %191 = vperm.xlu0 %1113, %v166_v12  }
  0xad   :  { %391 = vperm.xlu2 %1108, %v378_v10  }
  0xb4   :  { %1111 = vset.pattern.permute.xlu1 %v1334_v14  ;;  %1117 = vset.pattern.permute.xlu0 %v1331_v4 }
  0xb5   :  { %1110 = vset.pattern.permute.xlu2 %v1330_v3  ;;  %179 = vperm.xlu1 %1111, %v166_v12   ;;  %v1061_v3 = vld [vmem:[#allocation11 + $0x10] sm:$0xff] }
  0xb6   :  { %173 = vperm.xlu2 %1110, %v166_v12   ;;  %555 = vmatpush.bf16.msra.mxu3 %v1061_v3 }
  0xba   :  { %556 = vmatpush.bf16.msra.mxu3 %v1060_v15 }
  0xbd   :  { %1114 = vset.pattern.permute.xlu1 %v1335_v16  ;;  %v1048_v16 = vld [vmem:[#allocation10 + $0x28] sm:$0xff] }
  0xbe   :  { %1112 = vset.pattern.permute.xlu2 %v1332_v5  ;;  %197 = vperm.xlu1 %1114, %v166_v12  }
  0xbf   :  { %185 = vperm.xlu2 %1112, %v166_v12   ;;  %360 = vmatpush.bf16.msra.mxu1 %v1048_v16 }
  0xc0   :  { %557 = vmatpush.bf16.msra.mxu3 %v1059_v21 }
  0xc6   :  { %1116 = vset.pattern.permute.xlu1 %v1336_v28 }
  0xc7   :  { %1115 = vset.pattern.permute.xlu2 %v1328_v2  ;;  %565 = vperm.xlu1 %1116, %v1451_v0  }
  0xc8   :  { %207 = vperm.xlu2 %1115, %v1123_v17  }
  0xfd   :  { %v386_v31 = vpop.permute.xlu2 %385 }
  0xfe   :  { %vm387_vm2 = vcmp.eq.s32.totalorder %v1457_v8, %v386_v31  ;;  %v635_v31 = vld [vmem:[%s1513_s7] sm:$0xff] }
  0xff   :  { %v388_v39 = vsel %vm387_vm2, 1, %v1331_v4  ;;  %639 = vperm.xlu0 %1117, %v635_v31  }
 0x107   :  { %v392_v34 = vpop.permute.xlu2 %391 }
 0x108   :  { %vm393_vm3 = vcmp.eq.s32.totalorder %v1457_v8, %v392_v34  ;;  %v1118_v34 = vld [vmem:[%s1512_s6] ss:$0 sm:$0xff]  ;;  %s645_s6 = sld [smem:[#allocation13]] }
 0x109   :  { %v394_v42 = vsel %vm393_vm3, 1, %v1331_v4 }
 0x10e   :  { %v647_v3 = vstv %s645_s6 }
 0x110   :  { %v174_v45 = vpop.permute.xlu2 %173 }
 0x111   :  { %vm175_vm7 = vcmp.eq.s32.totalorder %v1457_v8, %v174_v45  ;;  %v1119_v45 = vld [vmem:[%s1510_s4] ss:$0 sm:$0xff]  ;;  %s970_s4 = sld [smem:[#allocation13 + $0x1]] }
 0x112   :  { %v176_v58 = vsel %vm175_vm7, 1, %v1331_v4 }
 0x115   :  { %v398_v36 = vpop.permute.xlu0 %397 }
 0x116   :  { %v381_v37 = vpop.permute.xlu1 %380  ;;  %vm399_vm5 = vcmp.eq.s32.totalorder %v1457_v8, %v398_v36 }
 0x117   :  { %vm382_vm4 = vcmp.eq.s32.totalorder %v1457_v8, %v381_v37  ;;  %v400_v46 = vsel %vm399_vm5, 1, %v1331_v4 }
 0x118   :  { %v383_v40 = vsel %vm382_vm4, 1, %v1331_v4 }
 0x119   :  { %v389_v41 = vadd.s32 %v388_v39, %v383_v40  ;;  %v186_v57 = vpop.permute.xlu2 %185 }
 0x11a   :  { %vm187_vm9 = vcmp.eq.s32.totalorder %v1457_v8, %v186_v57  ;;  %v1080_v57 = vld [vmem:[#allocation15 + $0x28] sm:$0xff] }
 0x11b   :  { %v395_v43 = vadd.s32 %v394_v42, %v389_v41  ;;  %v188_v1 = vsel %vm187_vm9, 1, %v1331_v4  ;;  %v1070_v41 = vld [vmem:[#allocation14 + $0x18] sm:$0xff] }
 0x11c   :  { %725 = vmatpush.bf16.msrb.mxu2 %v1070_v41 }
 0x11d   :  { %v401_v48 = vadd.s32 %v400_v46, %v395_v43  ;;  %v1069_v46 = vld [vmem:[#allocation14 + $0x10] sm:$0xff] }
 0x11e   :  { %v169_v50 = vpop.permute.xlu1 %168  ;;  %v192_v63 = vpop.permute.xlu0 %191 }
 0x11f   :  { %v402_v52 = vcvt.s32.f32 %v401_v48  ;;  %vm170_vm6 = vcmp.eq.s32.totalorder %v1457_v8, %v169_v50  ;;  %vm193_vm10 = vcmp.eq.s32.totalorder %v1457_v8, %v192_v63 }
 0x120   :  { %v171_v55 = vsel %vm170_vm6, 1, %v1331_v4  ;;  %v194_v5 = vsel %vm193_vm10, 1, %v1331_v4  ;;  %726 = vmatpush.bf16.msrb.mxu2 %v1069_v46 }
 0x121   :  { %v403_v53 = vpack.c.bf16 %v402_v52, %v402_v52  ;;  %v177_v60 = vadd.s32 %v176_v58, %v171_v55  ;;  %v1082_v55 = vld [vmem:[#allocation15 + $0x38] sm:$0xff]  ;;  %v1079_v58 = vld [vmem:[#allocation15 + $0x20] sm:$0xff] }
 0x122   :  { %v208_v11 = vpop.permute.xlu2 %207  ;;  %804 = vmatpush.bf16.msrb.mxu3 %v1082_v55 }
 0x123   :  { %476 = vmatmul.bf16.vlgmr.msra.gmra.mxu2 %v403_v53  ;;  %v1068_v53 = vld [vmem:[#allocation14 + $0x8] sm:$0xff] }
 0x124   :  { %727 = vmatpush.bf16.msrb.mxu2 %v1068_v53 }
 0x126   :  { %805 = vmatpush.bf16.msrb.mxu3 %v1081_v56 }
 0x127   :  { %v180_v59 = vpop.permute.xlu1 %179 }
 0x128   :  { %vm181_vm8 = vcmp.eq.s32.totalorder %v1457_v8, %v180_v59  ;;  %728 = vmatpush.bf16.msrb.mxu2 %v1067_v54 }
 0x129   :  { %v182_v61 = vsel %vm181_vm8, 1, %v1331_v4 }
 0x12a   :  { %v183_v0 = vadd.s32 %v182_v61, %v177_v60  ;;  %806 = vmatpush.bf16.msrb.mxu3 %v1080_v57  ;;  %v1078_v60 = vld [vmem:[#allocation15 + $0x18] sm:$0xff] }
 0x12c   :  { %v189_v2 = vadd.s32 %v188_v1, %v183_v0  ;;  %v649_v1 = vstv %s970_s4 }
 0x12e   :  { %v195_v7 = vadd.s32 %v194_v5, %v189_v2  ;;  %807 = vmatpush.bf16.msrb.mxu3 %v1079_v58 }
 0x130   :  { %v198_v6 = vpop.permute.xlu1 %197 }
 0x131   :  { %vm199_vm11 = vcmp.eq.s32.totalorder %v1457_v8, %v198_v6 }
 0x132   :  { %v200_v9 = vsel %vm199_vm11, 1, %v1331_v4  ;;  %v1047_v4 = vld [vmem:[#allocation10 + $0x20] sm:$0xff]  ;;  %808 = vmatpush.bf16.msrb.mxu3 %v1078_v60 }
 0x133   :  { %v201_v10 = vadd.s32 %v200_v9, %v195_v7  ;;  %361 = vmatpush.bf16.msra.mxu1 %v1047_v4 }
 0x135   :  { %v202_v12 = vcvt.s32.f32 %v201_v10 }
 0x136   :  { %809 = vmatpush.bf16.msrb.mxu3 %v1077_v62 }
 0x137   :  { %v210_v13 = vmul.f32 %v208_v11, %v202_v12  ;;  %362 = vmatpush.bf16.msra.mxu1 %v1046_v22  ;;  %v1076_v12 = vld [vmem:[#allocation15 + $0x8] sm:$0xff] }
 0x139   :  { %v211_v14 = vpack.c.bf16 %v210_v13, %v210_v13  ;;  %v566_v17 = vpop.permute.xlu1 %565  ;;  %v1075_v13 = vld [vmem:[#allocation15] sm:$0xff] }
 0x13a   :  { %vm567_vm12 = vcmp.eq.s32.totalorder %v566_v17, %v1457_v8  ;;  %810 = vmatpush.bf16.msrb.mxu3 %v1076_v12 }
 0x13b   :  { %284 = vmatmul.bf16.vlgmr.msra.gmra.mxu0 %v211_v14  ;;  %v967_v19 = vsel %vm567_vm12, 1.0, %v1337_v18  ;;  %363 = vmatpush.bf16.msra.mxu1 %v1045_v23  ;;  %v1120_v14 = vld [vmem:[%s1516_s10] ss:$0 sm:$0xff] }
 0x13c   :  { %v570_v20 = vpack.c.bf16 %v967_v19, %v967_v19 }
 0x13e   :  { %573 = vxpose.xlu2.c.b16.start.end [1/1] (short) (narrow) %v570_v20, 16  ;;  %811 = vmatpush.bf16.msrb.mxu3 %v1075_v13  ;;  %v1121_v20 = vld [vmem:[%s1518_s12] ss:$0 sm:$0xff] }
 0x13f   :  { %364 = vmatpush.bf16.msra.mxu1 %v1044_v24 }
 0x143   :  { %365 = vmatpush.bf16.msra.mxu1 %v1043_v25 }
 0x171   :  { %v640_v61 = vpop.permute.xlu0 %639 }
 0x1a6   :  { %v477_v26 = vpop.f32.mrf.mxu2 }
 0x1a7   :  { %v481_v27 = vpack.c.bf16 %v477_v26, %v477_v26 }
 0x1a9   :  { %558 = vmatmul.bf16.vlgmr.msra.gmra.mxu3 %v481_v27 }
 0x1ae   :  { %v479_v8 = vpop.f32.mrf.mxu2 }
 0x1b8   :  { %v285_v28 = vpop.f32.mrf.mxu0 }
 0x1b9   :  { %v289_v29 = vpack.c.bf16 %v285_v28, %v285_v28 }
 0x1bb   :  { %366 = vmatmul.bf16.vlgmr.msra.gmra.mxu1 %v289_v29 }
 0x1c0   :  { %v287_v30 = vpop.f32.mrf.mxu0 }
 0x1df   :  { %v581_v44 = vpop.trf.xlu2 }
 0x22c   :  { %v559_v36 = vpop.f32.mrf.mxu3 }
 0x22d   :  { %v560_v37 = vadd.f32 %v1118_v34, %v559_v36 }
 0x22f   :  { %v563_v39 = vmax.f32 %v560_v37, 0.0 }
 0x231   :  { %v613_v40 = vpack.c.bf16 %v563_v39, %v563_v39 }
 0x233   :  { %v615_v42 = vsel %vm593_vm13, %v613_v40, 0 }
 0x234   :  { %v561_v43 = vpop.f32.mrf.mxu3  ;;  %624 = vmatpush.bf16.msrb.mxu1 %v615_v42 }
 0x237   :  { %969 = vmatmul.msk.bf16.vlgmr.msrb.gmra.mxu1 %vm589_vm14, %v581_v44 }
 0x238   :  { %v367_v47 = vpop.f32.mrf.mxu1 }
 0x239   :  { %v368_v48 = vadd.f32 %v1119_v45, %v367_v47 }
 0x23b   :  { %v371_v49 = vmax.f32 %v368_v48, 0.0 }
 0x23d   :  { %v572_v50 = vpack.c.bf16 %v371_v49, %v371_v49 }
 0x23f   :  { %v595_v51 = vsel %vm593_vm13, %v572_v50, 0 }
 0x240   :  { %v369_v52 = vpop.f32.mrf.mxu1  ;;  %604 = vmatpush.bf16.msrb.mxu0 %v595_v51 }
 0x243   :  { %968 = vmatmul.msk.bf16.vlgmr.msrb.gmra.mxu0 %vm589_vm14, %v581_v44 }
 0x2b4   :  { %v626_v59 = vpop.f32.mrf.mxu1 }
 0x2b5   :  { %v644_v0 = vmul.f32 %v640_v61, %v626_v59 }
 0x2b7   :  { %v650_v6 = vmul.f32 %v649_v1, %v644_v0 }
 0x2bc   :  { %v628_v63 = vpop.f32.mrf.mxu1 }
 0x2c0   :  { %v606_v2 = vpop.f32.mrf.mxu0 }
 0x2c1   :  { %v642_v5 = vmul.f32 %v640_v61, %v606_v2 }
 0x2c3   :  { %v648_v7 = vmul.f32 %v647_v3, %v642_v5 }
 0x2c5   :  { %v651_v9 = vadd.f32 %v650_v6, %v648_v7 }
 0x2c7   :  { %v652_v10 = vpack.c.bf16 %v651_v9, %v651_v9 }
 0x2c8   :  { %v608_v11 = vpop.f32.mrf.mxu0 }
 0x2c9   :  { %729 = vmatmul.bf16.vlgmr.msrb.gmra.mxu2 %v652_v10 }
 0x34c   :  { %v730_v15 = vpop.f32.mrf.mxu2 }
 0x34d   :  { %v731_v16 = vadd.f32 %v1120_v14, %v730_v15 }
 0x34f   :  { %v734_v17 = vmax.f32 %v731_v16, 0.0 }
 0x351   :  { %v735_v18 = vpack.c.bf16 %v734_v17, %v734_v17 }
 0x353   :  { %812 = vmatmul.bf16.vlgmr.msrb.gmra.mxu3 %v735_v18 }
 0x354   :  { %v732_v19 = vpop.f32.mrf.mxu2 }
 0x3d6   :  { %v813_v21 = vpop.f32.mrf.mxu3 }
 0x3d7   :  { %v814_v4 = vadd.f32 %v1121_v20, %v813_v21 }
 0x3d9   :  { %817 = vst [vmem:[#allocation17] sm:$0xff] %v814_v4 }
 0x3da   :  { %828 = dma.vmem_to_hbm [thread:$0]  %s824_s29, 128, %s826_s14, [#allocation6]  }
 0x3de   :  { %v815_v22 = vpop.f32.mrf.mxu3 }
 0x3df   :  { %1316 = dma.done.wait [#allocation6], 128  }
 0x3e0   :  { %1317 = vsyncadd [#allocation6], 4294967168 }
 0x3e1   :  { %833 = vsyncpa [#allocation5], 1 }
 0x3e2   :  { %834 = vsyncpa [#allocation9], 1 }
 0x3e3   :  { %835 = vsyncpa [#allocation12], 1 }
 0x3e4   :  { %836 = vsyncpa [#allocation16], 1 }
 0x3e5   :  { %837 = vsyncpa [#allocation6], 1 }
 0x3e6   :  { %838 = vsyncpa [#allocation7], 1 }

</bundles_post_ra>
